<compile_context>
chip_gen: v5e
topology: v5e:2x2
jax: 0.10.0
libtpu: 0.0.40
codegen_flags: <defaults>
</compile_context>

<pallas_src>
import math

import jax
import jax.numpy as jnp
from jax.experimental import pallas as pl
from jax.experimental.pallas import tpu as pltpu

# ---------------- config (small, consistent with the module) ----------------
B = 2            # batch
S = 8            # sequence length
H = 32           # hidden_size
F = 14           # feature_size (manual features, JIT-Fine style)
I = 64           # FFN intermediate size
L = 2            # num_hidden_layers
VOCAB = 50
NUM_HEADS = 1    # single attention head
BS = B * S       # folded batch*seq rows

# ---------------- packed weight-slab row layout (all offsets 8-aligned) -----
LAYER_ROWS = 152
OFF_WQKVO = 0            # (H, 4H)  rows   0..31   [Wq|Wk|Wv|Wo]
OFF_BQKVO = 32           # (1, 4H)  row   32       [bq|bk|bv|bo]
OFF_W1    = 40           # (H, I)   rows  40..71
OFF_B1    = 72           # (1, I)   row   72
OFF_W2    = 80           # (I, H)   rows  80..143
OFF_PH    = 144          # (5, H)   rows 144..148  [ln1g|ln1b|b2|ln2g|ln2b]
HEAD_BASE = L * LAYER_ROWS               # 304
OFF_WD = HEAD_BASE + 0                   # (F, H)
OFF_BD = HEAD_BASE + 16                  # (1, H)
OFF_WO = HEAD_BASE + 24                  # (1, 2H)
OFF_BO = HEAD_BASE + 32                  # (1, 1)
W_ROWS = HEAD_BASE + 40                  # 344 rows, 128 lanes

# ---------------- packed data-slab row layout -------------------------------
D_EMB  = 0               # (BS, H)   embeddings, batch folded
D_MASK = BS              # (BS, BS)  block-diagonal additive attention mask
D_MAN  = 2 * BS          # (B, F)    manual features; labels at lane F
D_ROWS = 40

# ---------------- output-slab layout (8, 128) -------------------------------
# rows 0..B-1, lanes 0:S      -> last-layer attention, query position 0
# rows 0..B-1, lane  S        -> prob
# row  0,      lane  S+1      -> loss


# =============================================================================
# One fused kernel: L transformer layers + classification head + sigmoid + BCE.
# =============================================================================
def fused_model_kernel(w_ref, d_ref, out_ref):
    # Zero-fill the lane-dense output block once (padding lanes deterministic).
    out_ref[...] = jnp.zeros_like(out_ref)

    x = d_ref[D_EMB:D_EMB + BS, 0:H]                   # (BS, H) hidden states
    mask_big = d_ref[D_MASK:D_MASK + BS, 0:BS]         # (BS, BS) additive mask
    manual = d_ref[D_MAN:D_MAN + B, 0:F]               # (B, F)
    labels = d_ref[D_MAN:D_MAN + B, F:F + 1]           # (B, 1)

    def layernorm(v, g, b):
        mu = jnp.mean(v, axis=-1, keepdims=True)
        var = jnp.mean((v - mu) * (v - mu), axis=-1, keepdims=True)
        return (v - mu) * jax.lax.rsqrt(var + 1e-5) * g + b

    scale = 1.0 / math.sqrt(H / NUM_HEADS)

    for l in range(L):                                 # static unrolled layers
        base = l * LAYER_ROWS
        w_qkvo = w_ref[base + OFF_WQKVO:base + OFF_WQKVO + H, :]    # (H, 4H)
        b_qkvo = w_ref[base + OFF_BQKVO:base + OFF_BQKVO + 1, :]    # (1, 4H)

        # Full 128-lane MXU push; O columns are unused here but cost nothing.
        qkvo = jnp.dot(x, w_qkvo, preferred_element_type=jnp.float32) + b_qkvo
        q = qkvo[:, 0:H]
        k = qkvo[:, H:2 * H]
        v = qkvo[:, 2 * H:3 * H]

        # Block-diagonal attention over the folded batch: one (BS,BS) score
        # matmul; cross-batch entries carry -1e9 in mask_big so the softmax
        # equals the per-batch softmax.
        scores = (jnp.dot(q, k.T, preferred_element_type=jnp.float32) * scale
                  + mask_big)
        scores = scores - jnp.max(scores, axis=-1, keepdims=True)
        p = jnp.exp(scores)
        p = p * pl.reciprocal(jnp.sum(p, axis=-1, keepdims=True), approx=True)

        if l == L - 1:
            # Last-layer attention, query position 0 of each batch element:
            # direct row stores into the output slab (no concatenate).
            for b in range(B):
                out_ref[b:b + 1, 0:S] = p[b * S:b * S + 1, b * S:b * S + S]

        ctx = jnp.dot(p, v, preferred_element_type=jnp.float32)     # (BS, H)
        attn_out = (jnp.dot(ctx, w_qkvo[:, 3 * H:4 * H],
                            preferred_element_type=jnp.float32)
                    + b_qkvo[:, 3 * H:4 * H])

        ph = w_ref[base + OFF_PH:base + OFF_PH + 5, 0:H]            # (5, H)
        x = layernorm(x + attn_out, ph[0:1, :], ph[1:2, :])

        h = (jnp.dot(x, w_ref[base + OFF_W1:base + OFF_W1 + H, 0:I],
                     preferred_element_type=jnp.float32)
             + w_ref[base + OFF_B1:base + OFF_B1 + 1, 0:I])
        # TODO(synk): HF RoBERTa uses exact (erf) GELU; tanh approximation kept
        #             for robust Mosaic lowering, numerically very close.
        h = jax.nn.gelu(h, approximate=True)
        h = (jnp.dot(h, w_ref[base + OFF_W2:base + OFF_W2 + I, 0:H],
                     preferred_element_type=jnp.float32)
             + ph[2:3, :])
        x = layernorm(x + h, ph[3:4, :], ph[4:5, :])

    # ---------------- classification head epilogue ----------------
    wd = w_ref[OFF_WD:OFF_WD + F, 0:H]
    bd = w_ref[OFF_BD:OFF_BD + 1, 0:H]
    wo = w_ref[OFF_WO:OFF_WO + 1, 0:2 * H]
    bo = w_ref[OFF_BO:OFF_BO + 1, 0:1]

    # CLS rows (0, S, 2S, ...) via a tiny one-hot selector matmul: one MXU
    # push, no concatenate / reshape relayouts.
    col = jax.lax.broadcasted_iota(jnp.int32, (B, BS), 1)
    row0 = jax.lax.broadcasted_iota(jnp.int32, (B, BS), 0) * S
    cls = jnp.dot((col == row0).astype(jnp.float32), x,
                  preferred_element_type=jnp.float32)               # (B, H)

    y = jnp.tanh(jnp.dot(manual, wd, preferred_element_type=jnp.float32) + bd)
    # concat([cls, y]) @ Wo  ==  sum(cls*Wo[:H]) + sum(y*Wo[H:])   (Wo row)
    logits = (jnp.sum(cls * wo[:, 0:H], axis=-1, keepdims=True)
              + jnp.sum(y * wo[:, H:2 * H], axis=-1, keepdims=True)
              + bo)                                                  # (B, 1)
    out_ref[0:B, S:S + 1] = jax.nn.sigmoid(logits)

    # BCE from logits, stable form: softplus(z) - y*z == -[y log p + (1-y) log(1-p)]
    # TODO(synk): torch.nn.BCELoss clamps log() at -100; equivalent here for
    #             finite sigmoid outputs and free of log(0) hazards.
    sp = jnp.maximum(logits, 0.0) + jnp.log(1.0 + jnp.exp(-jnp.abs(logits)))
    out_ref[0:1, S + 1:S + 2] = (
        jnp.sum(sp - labels * logits, axis=0, keepdims=True) / float(B))


def run_model(w_slab, d_slab):
    full = lambda shape: pl.BlockSpec(shape, lambda i: (0,) * len(shape))
    return pl.pallas_call(
        fused_model_kernel,
        grid=(1,),
        in_specs=[full((W_ROWS, 128)), full((D_ROWS, 128))],
        out_specs=full((8, 128)),
        out_shape=jax.ShapeDtypeStruct((8, 128), jnp.float32),
        compiler_params=pltpu.CompilerParams(dimension_semantics=("arbitrary",)),
    )(w_slab, d_slab)


# =============================================================================
# Parameter init (deterministic, packed once) and end-to-end forward
# =============================================================================
def pack_weights(enc, head):
    w = jnp.zeros((W_ROWS, 128), jnp.float32)
    for l in range(L):
        base = l * LAYER_ROWS
        w = w.at[base + OFF_WQKVO:base + OFF_WQKVO + H, :].set(enc["wqkvo"][l])
        w = w.at[base + OFF_BQKVO:base + OFF_BQKVO + 1, :].set(enc["bqkvo"][l])
        w = w.at[base + OFF_W1:base + OFF_W1 + H, 0:I].set(enc["w1"][l])
        w = w.at[base + OFF_B1:base + OFF_B1 + 1, 0:I].set(enc["b1"][l])
        w = w.at[base + OFF_W2:base + OFF_W2 + I, 0:H].set(enc["w2"][l])
        w = w.at[base + OFF_PH:base + OFF_PH + 5, 0:H].set(enc["ph"][l])
    w = w.at[OFF_WD:OFF_WD + F, 0:H].set(head["wd"])
    w = w.at[OFF_BD:OFF_BD + 1, 0:H].set(head["bd"])
    w = w.at[OFF_WO:OFF_WO + 1, 0:2 * H].set(head["wo"])
    w = w.at[OFF_BO:OFF_BO + 1, 0:1].set(head["bo"])
    return w


def pack_data(emb_flat, mask_big, manual, labels_col):
    d = jnp.zeros((D_ROWS, 128), jnp.float32)
    d = d.at[D_EMB:D_EMB + BS, 0:H].set(emb_flat)
    d = d.at[D_MASK:D_MASK + BS, 0:BS].set(mask_big)
    d = d.at[D_MAN:D_MAN + B, 0:F].set(manual.astype(jnp.float32))
    d = d.at[D_MAN:D_MAN + B, F:F + 1].set(labels_col.astype(jnp.float32))
    return d


def init_params(key):
    keys = jax.random.split(key, 8)
    n = lambda i, shape: (0.02 * jax.random.normal(keys[i], shape)).astype(jnp.float32)
    word_emb = n(0, (VOCAB, H))
    pos_emb = n(1, (S, H))
    ph = jnp.zeros((L, 5, H), jnp.float32)
    ph = ph.at[:, 0, :].set(1.0)   # ln1 gamma
    ph = ph.at[:, 3, :].set(1.0)   # ln2 gamma
    enc = dict(
        wqkvo=n(2, (L, H, 4 * H)),
        bqkvo=jnp.zeros((L, 1, 4 * H), jnp.float32),
        w1=n(3, (L, H, I)),
        b1=jnp.zeros((L, 1, I), jnp.float32),
        w2=n(4, (L, I, H)),
        ph=ph,
    )
    head = dict(
        wd=n(5, (F, H)),
        bd=jnp.zeros((1, H), jnp.float32),
        wo=n(6, (1, 2 * H)),           # out_proj weight stored as a row vector
        bo=jnp.zeros((1, 1), jnp.float32),
    )
    return word_emb, pos_emb, pack_weights(enc, head)


@jax.jit
def model_forward(params, input_ids, attn_masks, manual_features, labels):
    word_emb, pos_emb, w_slab = params
    # glue: embedding lookup (gather) + block-diagonal additive attention mask
    emb = word_emb[input_ids] + pos_emb[None, :, :]               # (B, S, H)
    emb_flat = emb.reshape(BS, H)
    add_mask = (1.0 - attn_masks.astype(jnp.float32)) * -1e9      # (B, S) per key
    same = jnp.eye(B, dtype=jnp.bool_)[:, None, :, None]          # (B,1,B,1)
    mask_big = jnp.where(same, add_mask[None, None, :, :], jnp.float32(-1e9))
    mask_big = jnp.broadcast_to(mask_big, (B, S, B, S)).reshape(BS, BS)

    d_slab = pack_data(emb_flat, mask_big, manual_features, labels[:, None])
    out = run_model(w_slab, d_slab)                               # (8, 128)

    prob = out[0:B, S:S + 1]                                      # (B, 1)
    loss = out[0, S + 1]
    last_layer_attn = out[0:B, 0:S].reshape(B, NUM_HEADS, S)      # attn[-1][:, :, 0]
    return loss, prob, last_layer_attn


if __name__ == "__main__":
    key = jax.random.PRNGKey(0)
    pkey, ikey, mkey, lkey = jax.random.split(key, 4)

    params = init_params(pkey)
    input_ids = jax.random.randint(ikey, (B, S), 0, VOCAB)
    attn_masks = jnp.ones((B, S), dtype=jnp.int32)
    manual_features = jax.random.normal(mkey, (B, F), dtype=jnp.float32)
    labels = jax.random.randint(lkey, (B,), 0, 2).astype(jnp.float32)

    loss, prob, last_attn = model_forward(params, input_ids, attn_masks,
                                          manual_features, labels)
    jax.block_until_ready((loss, prob, last_attn))

    assert prob.shape == (B, 1)
    assert last_attn.shape == (B, NUM_HEADS, S)
    assert bool(jnp.isfinite(loss))
    assert bool(jnp.all((prob > 0.0) & (prob < 1.0)))
    print("KERNEL_OK")
</pallas_src>

<mosaic_0001>
module attributes {stable_mosaic.version = 11 : i64} {
  func.func @fused_model_kernel(%arg0: i32, %arg1: memref<344x128xf32, #tpu.memory_space<vmem>>, %arg2: memref<40x128xf32, #tpu.memory_space<vmem>>, %arg3: memref<8x128xf32, #tpu.memory_space<vmem>>) attributes {dimension_semantics = [#tpu.dimension_semantics<arbitrary>], iteration_bounds = array<i64: 1>, scalar_prefetch = 0 : i64, scratch_operands = 0 : i64, tpu.core_type = #tpu.core_type<tc>, window_params = [{pipeline_mode = #tpu.pipeline_mode<synchronous>, transform_indices = @transform_0, window_bounds = array<i64: 344, 128>}, {pipeline_mode = #tpu.pipeline_mode<synchronous>, transform_indices = @transform_1, window_bounds = array<i64: 40, 128>}, {pipeline_mode = #tpu.pipeline_mode<synchronous>, transform_indices = @transform_2, window_bounds = array<i64: 8, 128>}]} {
    %cst = arith.constant 0.000000e+00 : f32
    %0 = vector.broadcast %cst : f32 to vector<8x128xf32>
    %c0 = arith.constant 0 : index
    %c0_0 = arith.constant 0 : index
    %1 = vector.load %arg3[%c0, %c0_0] : memref<8x128xf32, #tpu.memory_space<vmem>>, vector<8x128xf32>
    tpu.vector_store %arg3[%c0, %c0_0], %0 {strides = array<i32>} : memref<8x128xf32, #tpu.memory_space<vmem>>, vector<8x128xf32>,
    %c0_1 = arith.constant 0 : index
    %c0_2 = arith.constant 0 : index
    %2 = vector.load %arg2[%c0_1, %c0_2] : memref<40x128xf32, #tpu.memory_space<vmem>>, vector<16x32xf32>
    %c16 = arith.constant 16 : index
    %c0_3 = arith.constant 0 : index
    %3 = vector.load %arg2[%c16, %c0_3] : memref<40x128xf32, #tpu.memory_space<vmem>>, vector<16x16xf32>
    %c32 = arith.constant 32 : index
    %c0_4 = arith.constant 0 : index
    %4 = vector.load %arg2[%c32, %c0_4] : memref<40x128xf32, #tpu.memory_space<vmem>>, vector<2x14xf32>
    %c32_5 = arith.constant 32 : index
    %c14 = arith.constant 14 : index
    %5 = vector.load %arg2[%c32_5, %c14] : memref<40x128xf32, #tpu.memory_space<vmem>>, vector<2x1xf32>
    %c0_6 = arith.constant 0 : index
    %c0_7 = arith.constant 0 : index
    %6 = vector.load %arg1[%c0_6, %c0_7] : memref<344x128xf32, #tpu.memory_space<vmem>>, vector<32x128xf32>
    %c32_8 = arith.constant 32 : index
    %c0_9 = arith.constant 0 : index
    %7 = vector.load %arg1[%c32_8, %c0_9] : memref<344x128xf32, #tpu.memory_space<vmem>>, vector<1x128xf32>
    %cst_10 = arith.constant dense<0.000000e+00> : vector<16x128xf32>
    %8 = tpu.matmul %2, %6, %cst_10 {dimension_numbers = #tpu.dot_dimension_numbers<[1], [0], [0], [1], [0, 0, 1, 1], [], []>} : vector<16x32xf32>, vector<32x128xf32>, vector<16x128xf32> -> vector<16x128xf32>
    %9 = vector.broadcast %7 : vector<1x128xf32> to vector<16x128xf32>
    %10 = arith.addf %8, %9 : vector<16x128xf32>
    %11 = vector.extract_strided_slice %10 {offsets = [0, 0], sizes = [16, 32], strides = [1, 1]} : vector<16x128xf32> to vector<16x32xf32>
    %12 = vector.extract_strided_slice %10 {offsets = [0, 32], sizes = [16, 32], strides = [1, 1]} : vector<16x128xf32> to vector<16x32xf32>
    %13 = vector.extract_strided_slice %10 {offsets = [0, 64], sizes = [16, 32], strides = [1, 1]} : vector<16x128xf32> to vector<16x32xf32>
    %14 = tpu.transpose %12, [1, 0] : vector<16x32xf32> -> vector<32x16xf32>
    %cst_11 = arith.constant dense<0.000000e+00> : vector<16x16xf32>
    %15 = tpu.matmul %11, %14, %cst_11 {dimension_numbers = #tpu.dot_dimension_numbers<[1], [0], [0], [1], [0, 0, 1, 1], [], []>} : vector<16x32xf32>, vector<32x16xf32>, vector<16x16xf32> -> vector<16x16xf32>
    %cst_12 = arith.constant 0.176776692 : f32
    %16 = vector.broadcast %cst_12 : f32 to vector<16x16xf32>
    %17 = arith.mulf %15, %16 : vector<16x16xf32>
    %18 = arith.addf %17, %3 : vector<16x16xf32>
    %cst_13 = arith.constant dense<0xFF800000> : vector<16xf32>
    %19 = vector.multi_reduction <maximumf>, %18, %cst_13 [1] : vector<16x16xf32> to vector<16xf32>
    %20 = vector.shape_cast %19 : vector<16xf32> to vector<16x1xf32>
    %21 = vector.broadcast %20 : vector<16x1xf32> to vector<16x16xf32>
    %22 = arith.subf %18, %21 : vector<16x16xf32>
    %23 = math.exp %22 : vector<16x16xf32>
    %cst_14 = arith.constant dense<0.000000e+00> : vector<16xf32>
    %24 = vector.multi_reduction <add>, %23, %cst_14 [1] : vector<16x16xf32> to vector<16xf32>
    %25 = vector.shape_cast %24 : vector<16xf32> to vector<16x1xf32>
    %26 = tpu.reciprocal %25 {approx = true} : vector<16x1xf32> -> vector<16x1xf32>
    %27 = vector.broadcast %26 : vector<16x1xf32> to vector<16x16xf32>
    %28 = arith.mulf %23, %27 : vector<16x16xf32>
    %cst_15 = arith.constant dense<0.000000e+00> : vector<16x32xf32>
    %29 = tpu.matmul %28, %13, %cst_15 {dimension_numbers = #tpu.dot_dimension_numbers<[1], [0], [0], [1], [0, 0, 1, 1], [], []>} : vector<16x16xf32>, vector<16x32xf32>, vector<16x32xf32> -> vector<16x32xf32>
    %30 = vector.extract_strided_slice %6 {offsets = [0, 96], sizes = [32, 32], strides = [1, 1]} : vector<32x128xf32> to vector<32x32xf32>
    %cst_16 = arith.constant dense<0.000000e+00> : vector<16x32xf32>
    %31 = tpu.matmul %29, %30, %cst_16 {dimension_numbers = #tpu.dot_dimension_numbers<[1], [0], [0], [1], [0, 0, 1, 1], [], []>} : vector<16x32xf32>, vector<32x32xf32>, vector<16x32xf32> -> vector<16x32xf32>
    %32 = vector.extract_strided_slice %7 {offsets = [0, 96], sizes = [1, 32], strides = [1, 1]} : vector<1x128xf32> to vector<1x32xf32>
    %33 = vector.broadcast %32 : vector<1x32xf32> to vector<16x32xf32>
    %34 = arith.addf %31, %33 : vector<16x32xf32>
    %c144 = arith.constant 144 : index
    %c0_17 = arith.constant 0 : index
    %35 = vector.load %arg1[%c144, %c0_17] : memref<344x128xf32, #tpu.memory_space<vmem>>, vector<5x32xf32>
    %36 = arith.addf %2, %34 : vector<16x32xf32>
    %37 = vector.extract_strided_slice %35 {offsets = [0, 0], sizes = [1, 32], strides = [1, 1]} : vector<5x32xf32> to vector<1x32xf32>
    %38 = vector.extract_strided_slice %35 {offsets = [1, 0], sizes = [1, 32], strides = [1, 1]} : vector<5x32xf32> to vector<1x32xf32>
    %cst_18 = arith.constant dense<0.000000e+00> : vector<16xf32>
    %39 = vector.multi_reduction <add>, %36, %cst_18 [1] : vector<16x32xf32> to vector<16xf32>
    %40 = vector.shape_cast %39 : vector<16xf32> to vector<16x1xf32>
    %cst_19 = arith.constant 3.200000e+01 : f32
    %41 = vector.broadcast %cst_19 : f32 to vector<16x1xf32>
    %42 = arith.divf %40, %41 : vector<16x1xf32>
    %43 = vector.broadcast %42 : vector<16x1xf32> to vector<16x32xf32>
    %44 = arith.subf %36, %43 : vector<16x32xf32>
    %45 = vector.broadcast %42 : vector<16x1xf32> to vector<16x32xf32>
    %46 = arith.subf %36, %45 : vector<16x32xf32>
    %47 = arith.mulf %44, %46 : vector<16x32xf32>
    %cst_20 = arith.constant dense<0.000000e+00> : vector<16xf32>
    %48 = vector.multi_reduction <add>, %47, %cst_20 [1] : vector<16x32xf32> to vector<16xf32>
    %49 = vector.shape_cast %48 : vector<16xf32> to vector<16x1xf32>
    %cst_21 = arith.constant 3.200000e+01 : f32
    %50 = vector.broadcast %cst_21 : f32 to vector<16x1xf32>
    %51 = arith.divf %49, %50 : vector<16x1xf32>
    %52 = vector.broadcast %42 : vector<16x1xf32> to vector<16x32xf32>
    %53 = arith.subf %36, %52 : vector<16x32xf32>
    %cst_22 = arith.constant 9.99999974E-6 : f32
    %54 = vector.broadcast %cst_22 : f32 to vector<16x1xf32>
    %55 = arith.addf %51, %54 : vector<16x1xf32>
    %56 = math.rsqrt %55 : vector<16x1xf32>
    %57 = vector.broadcast %56 : vector<16x1xf32> to vector<16x32xf32>
    %58 = arith.mulf %53, %57 : vector<16x32xf32>
    %59 = vector.broadcast %37 : vector<1x32xf32> to vector<16x32xf32>
    %60 = arith.mulf %58, %59 : vector<16x32xf32>
    %61 = vector.broadcast %38 : vector<1x32xf32> to vector<16x32xf32>
    %62 = arith.addf %60, %61 : vector<16x32xf32>
    %c40 = arith.constant 40 : index
    %c0_23 = arith.constant 0 : index
    %63 = vector.load %arg1[%c40, %c0_23] : memref<344x128xf32, #tpu.memory_space<vmem>>, vector<32x64xf32>
    %cst_24 = arith.constant dense<0.000000e+00> : vector<16x64xf32>
    %64 = tpu.matmul %62, %63, %cst_24 {dimension_numbers = #tpu.dot_dimension_numbers<[1], [0], [0], [1], [0, 0, 1, 1], [], []>} : vector<16x32xf32>, vector<32x64xf32>, vector<16x64xf32> -> vector<16x64xf32>
    %c72 = arith.constant 72 : index
    %c0_25 = arith.constant 0 : index
    %65 = vector.load %arg1[%c72, %c0_25] : memref<344x128xf32, #tpu.memory_space<vmem>>, vector<1x64xf32>
    %66 = vector.broadcast %65 : vector<1x64xf32> to vector<16x64xf32>
    %67 = arith.addf %64, %66 : vector<16x64xf32>
    %68 = arith.mulf %67, %67 : vector<16x64xf32>
    %69 = arith.mulf %67, %68 : vector<16x64xf32>
    %cst_26 = arith.constant 4.471500e-02 : f32
    %70 = vector.broadcast %cst_26 : f32 to vector<16x64xf32>
    %71 = arith.mulf %70, %69 : vector<16x64xf32>
    %72 = arith.addf %67, %71 : vector<16x64xf32>
    %cst_27 = arith.constant 0.797884583 : f32
    %73 = vector.broadcast %cst_27 : f32 to vector<16x64xf32>
    %74 = arith.mulf %73, %72 : vector<16x64xf32>
    %75 = math.tanh %74 : vector<16x64xf32>
    %cst_28 = arith.constant 1.000000e+00 : f32
    %76 = vector.broadcast %cst_28 : f32 to vector<16x64xf32>
    %77 = arith.addf %76, %75 : vector<16x64xf32>
    %cst_29 = arith.constant 5.000000e-01 : f32
    %78 = vector.broadcast %cst_29 : f32 to vector<16x64xf32>
    %79 = arith.mulf %78, %77 : vector<16x64xf32>
    %80 = arith.mulf %67, %79 : vector<16x64xf32>
    %c80 = arith.constant 80 : index
    %c0_30 = arith.constant 0 : index
    %81 = vector.load %arg1[%c80, %c0_30] : memref<344x128xf32, #tpu.memory_space<vmem>>, vector<64x32xf32>
    %cst_31 = arith.constant dense<0.000000e+00> : vector<16x32xf32>
    %82 = tpu.matmul %80, %81, %cst_31 {dimension_numbers = #tpu.dot_dimension_numbers<[1], [0], [0], [1], [0, 0, 1, 1], [], []>} : vector<16x64xf32>, vector<64x32xf32>, vector<16x32xf32> -> vector<16x32xf32>
    %83 = vector.extract_strided_slice %35 {offsets = [2, 0], sizes = [1, 32], strides = [1, 1]} : vector<5x32xf32> to vector<1x32xf32>
    %84 = vector.broadcast %83 : vector<1x32xf32> to vector<16x32xf32>
    %85 = arith.addf %82, %84 : vector<16x32xf32>
    %86 = arith.addf %62, %85 : vector<16x32xf32>
    %87 = vector.extract_strided_slice %35 {offsets = [3, 0], sizes = [1, 32], strides = [1, 1]} : vector<5x32xf32> to vector<1x32xf32>
    %88 = vector.extract_strided_slice %35 {offsets = [4, 0], sizes = [1, 32], strides = [1, 1]} : vector<5x32xf32> to vector<1x32xf32>
    %cst_32 = arith.constant dense<0.000000e+00> : vector<16xf32>
    %89 = vector.multi_reduction <add>, %86, %cst_32 [1] : vector<16x32xf32> to vector<16xf32>
    %90 = vector.shape_cast %89 : vector<16xf32> to vector<16x1xf32>
    %cst_33 = arith.constant 3.200000e+01 : f32
    %91 = vector.broadcast %cst_33 : f32 to vector<16x1xf32>
    %92 = arith.divf %90, %91 : vector<16x1xf32>
    %93 = vector.broadcast %92 : vector<16x1xf32> to vector<16x32xf32>
    %94 = arith.subf %86, %93 : vector<16x32xf32>
    %95 = vector.broadcast %92 : vector<16x1xf32> to vector<16x32xf32>
    %96 = arith.subf %86, %95 : vector<16x32xf32>
    %97 = arith.mulf %94, %96 : vector<16x32xf32>
    %cst_34 = arith.constant dense<0.000000e+00> : vector<16xf32>
    %98 = vector.multi_reduction <add>, %97, %cst_34 [1] : vector<16x32xf32> to vector<16xf32>
    %99 = vector.shape_cast %98 : vector<16xf32> to vector<16x1xf32>
    %cst_35 = arith.constant 3.200000e+01 : f32
    %100 = vector.broadcast %cst_35 : f32 to vector<16x1xf32>
    %101 = arith.divf %99, %100 : vector<16x1xf32>
    %102 = vector.broadcast %92 : vector<16x1xf32> to vector<16x32xf32>
    %103 = arith.subf %86, %102 : vector<16x32xf32>
    %cst_36 = arith.constant 9.99999974E-6 : f32
    %104 = vector.broadcast %cst_36 : f32 to vector<16x1xf32>
    %105 = arith.addf %101, %104 : vector<16x1xf32>
    %106 = math.rsqrt %105 : vector<16x1xf32>
    %107 = vector.broadcast %106 : vector<16x1xf32> to vector<16x32xf32>
    %108 = arith.mulf %103, %107 : vector<16x32xf32>
    %109 = vector.broadcast %87 : vector<1x32xf32> to vector<16x32xf32>
    %110 = arith.mulf %108, %109 : vector<16x32xf32>
    %111 = vector.broadcast %88 : vector<1x32xf32> to vector<16x32xf32>
    %112 = arith.addf %110, %111 : vector<16x32xf32>
    %c152 = arith.constant 152 : index
    %c0_37 = arith.constant 0 : index
    %113 = vector.load %arg1[%c152, %c0_37] : memref<344x128xf32, #tpu.memory_space<vmem>>, vector<32x128xf32>
    %c184 = arith.constant 184 : index
    %c0_38 = arith.constant 0 : index
    %114 = vector.load %arg1[%c184, %c0_38] : memref<344x128xf32, #tpu.memory_space<vmem>>, vector<1x128xf32>
    %cst_39 = arith.constant dense<0.000000e+00> : vector<16x128xf32>
    %115 = tpu.matmul %112, %113, %cst_39 {dimension_numbers = #tpu.dot_dimension_numbers<[1], [0], [0], [1], [0, 0, 1, 1], [], []>} : vector<16x32xf32>, vector<32x128xf32>, vector<16x128xf32> -> vector<16x128xf32>
    %116 = vector.broadcast %114 : vector<1x128xf32> to vector<16x128xf32>
    %117 = arith.addf %115, %116 : vector<16x128xf32>
    %118 = vector.extract_strided_slice %117 {offsets = [0, 0], sizes = [16, 32], strides = [1, 1]} : vector<16x128xf32> to vector<16x32xf32>
    %119 = vector.extract_strided_slice %117 {offsets = [0, 32], sizes = [16, 32], strides = [1, 1]} : vector<16x128xf32> to vector<16x32xf32>
    %120 = vector.extract_strided_slice %117 {offsets = [0, 64], sizes = [16, 32], strides = [1, 1]} : vector<16x128xf32> to vector<16x32xf32>
    %121 = tpu.transpose %119, [1, 0] : vector<16x32xf32> -> vector<32x16xf32>
    %cst_40 = arith.constant dense<0.000000e+00> : vector<16x16xf32>
    %122 = tpu.matmul %118, %121, %cst_40 {dimension_numbers = #tpu.dot_dimension_numbers<[1], [0], [0], [1], [0, 0, 1, 1], [], []>} : vector<16x32xf32>, vector<32x16xf32>, vector<16x16xf32> -> vector<16x16xf32>
    %cst_41 = arith.constant 0.176776692 : f32
    %123 = vector.broadcast %cst_41 : f32 to vector<16x16xf32>
    %124 = arith.mulf %122, %123 : vector<16x16xf32>
    %125 = arith.addf %124, %3 : vector<16x16xf32>
    %cst_42 = arith.constant dense<0xFF800000> : vector<16xf32>
    %126 = vector.multi_reduction <maximumf>, %125, %cst_42 [1] : vector<16x16xf32> to vector<16xf32>
    %127 = vector.shape_cast %126 : vector<16xf32> to vector<16x1xf32>
    %128 = vector.broadcast %127 : vector<16x1xf32> to vector<16x16xf32>
    %129 = arith.subf %125, %128 : vector<16x16xf32>
    %130 = math.exp %129 : vector<16x16xf32>
    %cst_43 = arith.constant dense<0.000000e+00> : vector<16xf32>
    %131 = vector.multi_reduction <add>, %130, %cst_43 [1] : vector<16x16xf32> to vector<16xf32>
    %132 = vector.shape_cast %131 : vector<16xf32> to vector<16x1xf32>
    %133 = tpu.reciprocal %132 {approx = true} : vector<16x1xf32> -> vector<16x1xf32>
    %134 = vector.broadcast %133 : vector<16x1xf32> to vector<16x16xf32>
    %135 = arith.mulf %130, %134 : vector<16x16xf32>
    %136 = vector.extract_strided_slice %135 {offsets = [0, 0], sizes = [1, 8], strides = [1, 1]} : vector<16x16xf32> to vector<1x8xf32>
    %c0_44 = arith.constant 0 : index
    %c0_45 = arith.constant 0 : index
    %137 = vector.load %arg3[%c0_44, %c0_45] : memref<8x128xf32, #tpu.memory_space<vmem>>, vector<1x8xf32>
    tpu.vector_store %arg3[%c0_44, %c0_45], %136 {strides = array<i32>} : memref<8x128xf32, #tpu.memory_space<vmem>>, vector<1x8xf32>,
    %138 = vector.extract_strided_slice %135 {offsets = [8, 8], sizes = [1, 8], strides = [1, 1]} : vector<16x16xf32> to vector<1x8xf32>
    %c1 = arith.constant 1 : index
    %c0_46 = arith.constant 0 : index
    %139 = vector.load %arg3[%c1, %c0_46] : memref<8x128xf32, #tpu.memory_space<vmem>>, vector<1x8xf32>
    tpu.vector_store %arg3[%c1, %c0_46], %138 {strides = array<i32>} : memref<8x128xf32, #tpu.memory_space<vmem>>, vector<1x8xf32>,
    %cst_47 = arith.constant dense<0.000000e+00> : vector<16x32xf32>
    %140 = tpu.matmul %135, %120, %cst_47 {dimension_numbers = #tpu.dot_dimension_numbers<[1], [0], [0], [1], [0, 0, 1, 1], [], []>} : vector<16x16xf32>, vector<16x32xf32>, vector<16x32xf32> -> vector<16x32xf32>
    %141 = vector.extract_strided_slice %113 {offsets = [0, 96], sizes = [32, 32], strides = [1, 1]} : vector<32x128xf32> to vector<32x32xf32>
    %cst_48 = arith.constant dense<0.000000e+00> : vector<16x32xf32>
    %142 = tpu.matmul %140, %141, %cst_48 {dimension_numbers = #tpu.dot_dimension_numbers<[1], [0], [0], [1], [0, 0, 1, 1], [], []>} : vector<16x32xf32>, vector<32x32xf32>, vector<16x32xf32> -> vector<16x32xf32>
    %143 = vector.extract_strided_slice %114 {offsets = [0, 96], sizes = [1, 32], strides = [1, 1]} : vector<1x128xf32> to vector<1x32xf32>
    %144 = vector.broadcast %143 : vector<1x32xf32> to vector<16x32xf32>
    %145 = arith.addf %142, %144 : vector<16x32xf32>
    %c296 = arith.constant 296 : index
    %c0_49 = arith.constant 0 : index
    %146 = vector.load %arg1[%c296, %c0_49] : memref<344x128xf32, #tpu.memory_space<vmem>>, vector<5x32xf32>
    %147 = arith.addf %112, %145 : vector<16x32xf32>
    %148 = vector.extract_strided_slice %146 {offsets = [0, 0], sizes = [1, 32], strides = [1, 1]} : vector<5x32xf32> to vector<1x32xf32>
    %149 = vector.extract_strided_slice %146 {offsets = [1, 0], sizes = [1, 32], strides = [1, 1]} : vector<5x32xf32> to vector<1x32xf32>
    %cst_50 = arith.constant dense<0.000000e+00> : vector<16xf32>
    %150 = vector.multi_reduction <add>, %147, %cst_50 [1] : vector<16x32xf32> to vector<16xf32>
    %151 = vector.shape_cast %150 : vector<16xf32> to vector<16x1xf32>
    %cst_51 = arith.constant 3.200000e+01 : f32
    %152 = vector.broadcast %cst_51 : f32 to vector<16x1xf32>
    %153 = arith.divf %151, %152 : vector<16x1xf32>
    %154 = vector.broadcast %153 : vector<16x1xf32> to vector<16x32xf32>
    %155 = arith.subf %147, %154 : vector<16x32xf32>
    %156 = vector.broadcast %153 : vector<16x1xf32> to vector<16x32xf32>
    %157 = arith.subf %147, %156 : vector<16x32xf32>
    %158 = arith.mulf %155, %157 : vector<16x32xf32>
    %cst_52 = arith.constant dense<0.000000e+00> : vector<16xf32>
    %159 = vector.multi_reduction <add>, %158, %cst_52 [1] : vector<16x32xf32> to vector<16xf32>
    %160 = vector.shape_cast %159 : vector<16xf32> to vector<16x1xf32>
    %cst_53 = arith.constant 3.200000e+01 : f32
    %161 = vector.broadcast %cst_53 : f32 to vector<16x1xf32>
    %162 = arith.divf %160, %161 : vector<16x1xf32>
    %163 = vector.broadcast %153 : vector<16x1xf32> to vector<16x32xf32>
    %164 = arith.subf %147, %163 : vector<16x32xf32>
    %cst_54 = arith.constant 9.99999974E-6 : f32
    %165 = vector.broadcast %cst_54 : f32 to vector<16x1xf32>
    %166 = arith.addf %162, %165 : vector<16x1xf32>
    %167 = math.rsqrt %166 : vector<16x1xf32>
    %168 = vector.broadcast %167 : vector<16x1xf32> to vector<16x32xf32>
    %169 = arith.mulf %164, %168 : vector<16x32xf32>
    %170 = vector.broadcast %148 : vector<1x32xf32> to vector<16x32xf32>
    %171 = arith.mulf %169, %170 : vector<16x32xf32>
    %172 = vector.broadcast %149 : vector<1x32xf32> to vector<16x32xf32>
    %173 = arith.addf %171, %172 : vector<16x32xf32>
    %c192 = arith.constant 192 : index
    %c0_55 = arith.constant 0 : index
    %174 = vector.load %arg1[%c192, %c0_55] : memref<344x128xf32, #tpu.memory_space<vmem>>, vector<32x64xf32>
    %cst_56 = arith.constant dense<0.000000e+00> : vector<16x64xf32>
    %175 = tpu.matmul %173, %174, %cst_56 {dimension_numbers = #tpu.dot_dimension_numbers<[1], [0], [0], [1], [0, 0, 1, 1], [], []>} : vector<16x32xf32>, vector<32x64xf32>, vector<16x64xf32> -> vector<16x64xf32>
    %c224 = arith.constant 224 : index
    %c0_57 = arith.constant 0 : index
    %176 = vector.load %arg1[%c224, %c0_57] : memref<344x128xf32, #tpu.memory_space<vmem>>, vector<1x64xf32>
    %177 = vector.broadcast %176 : vector<1x64xf32> to vector<16x64xf32>
    %178 = arith.addf %175, %177 : vector<16x64xf32>
    %179 = arith.mulf %178, %178 : vector<16x64xf32>
    %180 = arith.mulf %178, %179 : vector<16x64xf32>
    %cst_58 = arith.constant 4.471500e-02 : f32
    %181 = vector.broadcast %cst_58 : f32 to vector<16x64xf32>
    %182 = arith.mulf %181, %180 : vector<16x64xf32>
    %183 = arith.addf %178, %182 : vector<16x64xf32>
    %cst_59 = arith.constant 0.797884583 : f32
    %184 = vector.broadcast %cst_59 : f32 to vector<16x64xf32>
    %185 = arith.mulf %184, %183 : vector<16x64xf32>
    %186 = math.tanh %185 : vector<16x64xf32>
    %cst_60 = arith.constant 1.000000e+00 : f32
    %187 = vector.broadcast %cst_60 : f32 to vector<16x64xf32>
    %188 = arith.addf %187, %186 : vector<16x64xf32>
    %cst_61 = arith.constant 5.000000e-01 : f32
    %189 = vector.broadcast %cst_61 : f32 to vector<16x64xf32>
    %190 = arith.mulf %189, %188 : vector<16x64xf32>
    %191 = arith.mulf %178, %190 : vector<16x64xf32>
    %c232 = arith.constant 232 : index
    %c0_62 = arith.constant 0 : index
    %192 = vector.load %arg1[%c232, %c0_62] : memref<344x128xf32, #tpu.memory_space<vmem>>, vector<64x32xf32>
    %cst_63 = arith.constant dense<0.000000e+00> : vector<16x32xf32>
    %193 = tpu.matmul %191, %192, %cst_63 {dimension_numbers = #tpu.dot_dimension_numbers<[1], [0], [0], [1], [0, 0, 1, 1], [], []>} : vector<16x64xf32>, vector<64x32xf32>, vector<16x32xf32> -> vector<16x32xf32>
    %194 = vector.extract_strided_slice %146 {offsets = [2, 0], sizes = [1, 32], strides = [1, 1]} : vector<5x32xf32> to vector<1x32xf32>
    %195 = vector.broadcast %194 : vector<1x32xf32> to vector<16x32xf32>
    %196 = arith.addf %193, %195 : vector<16x32xf32>
    %197 = arith.addf %173, %196 : vector<16x32xf32>
    %198 = vector.extract_strided_slice %146 {offsets = [3, 0], sizes = [1, 32], strides = [1, 1]} : vector<5x32xf32> to vector<1x32xf32>
    %199 = vector.extract_strided_slice %146 {offsets = [4, 0], sizes = [1, 32], strides = [1, 1]} : vector<5x32xf32> to vector<1x32xf32>
    %cst_64 = arith.constant dense<0.000000e+00> : vector<16xf32>
    %200 = vector.multi_reduction <add>, %197, %cst_64 [1] : vector<16x32xf32> to vector<16xf32>
    %201 = vector.shape_cast %200 : vector<16xf32> to vector<16x1xf32>
    %cst_65 = arith.constant 3.200000e+01 : f32
    %202 = vector.broadcast %cst_65 : f32 to vector<16x1xf32>
    %203 = arith.divf %201, %202 : vector<16x1xf32>
    %204 = vector.broadcast %203 : vector<16x1xf32> to vector<16x32xf32>
    %205 = arith.subf %197, %204 : vector<16x32xf32>
    %206 = vector.broadcast %203 : vector<16x1xf32> to vector<16x32xf32>
    %207 = arith.subf %197, %206 : vector<16x32xf32>
    %208 = arith.mulf %205, %207 : vector<16x32xf32>
    %cst_66 = arith.constant dense<0.000000e+00> : vector<16xf32>
    %209 = vector.multi_reduction <add>, %208, %cst_66 [1] : vector<16x32xf32> to vector<16xf32>
    %210 = vector.shape_cast %209 : vector<16xf32> to vector<16x1xf32>
    %cst_67 = arith.constant 3.200000e+01 : f32
    %211 = vector.broadcast %cst_67 : f32 to vector<16x1xf32>
    %212 = arith.divf %210, %211 : vector<16x1xf32>
    %213 = vector.broadcast %203 : vector<16x1xf32> to vector<16x32xf32>
    %214 = arith.subf %197, %213 : vector<16x32xf32>
    %cst_68 = arith.constant 9.99999974E-6 : f32
    %215 = vector.broadcast %cst_68 : f32 to vector<16x1xf32>
    %216 = arith.addf %212, %215 : vector<16x1xf32>
    %217 = math.rsqrt %216 : vector<16x1xf32>
    %218 = vector.broadcast %217 : vector<16x1xf32> to vector<16x32xf32>
    %219 = arith.mulf %214, %218 : vector<16x32xf32>
    %220 = vector.broadcast %198 : vector<1x32xf32> to vector<16x32xf32>
    %221 = arith.mulf %219, %220 : vector<16x32xf32>
    %222 = vector.broadcast %199 : vector<1x32xf32> to vector<16x32xf32>
    %223 = arith.addf %221, %222 : vector<16x32xf32>
    %c304 = arith.constant 304 : index
    %c0_69 = arith.constant 0 : index
    %224 = vector.load %arg1[%c304, %c0_69] : memref<344x128xf32, #tpu.memory_space<vmem>>, vector<14x32xf32>
    %c320 = arith.constant 320 : index
    %c0_70 = arith.constant 0 : index
    %225 = vector.load %arg1[%c320, %c0_70] : memref<344x128xf32, #tpu.memory_space<vmem>>, vector<1x32xf32>
    %c328 = arith.constant 328 : index
    %c0_71 = arith.constant 0 : index
    %226 = vector.load %arg1[%c328, %c0_71] : memref<344x128xf32, #tpu.memory_space<vmem>>, vector<1x64xf32>
    %c336 = arith.constant 336 : index
    %c0_72 = arith.constant 0 : index
    %227 = vector.load %arg1[%c336, %c0_72] : memref<344x128xf32, #tpu.memory_space<vmem>>, vector<1x1xf32>
    %228 = tpu.iota {dimensions = array<i32: 1>} : vector<2x16xi32>
    %229 = tpu.iota {dimensions = array<i32: 0>} : vector<2x16xi32>
    %c8_i32 = arith.constant 8 : i32
    %230 = vector.broadcast %c8_i32 : i32 to vector<2x16xi32>
    %231 = arith.muli %229, %230 : vector<2x16xi32>
    %232 = arith.cmpi eq, %228, %231 : vector<2x16xi32>
    %233 = arith.extui %232 : vector<2x16xi1> to vector<2x16xi32>
    %234 = arith.sitofp %233 : vector<2x16xi32> to vector<2x16xf32>
    %cst_73 = arith.constant dense<0.000000e+00> : vector<2x32xf32>
    %235 = tpu.matmul %234, %223, %cst_73 {dimension_numbers = #tpu.dot_dimension_numbers<[1], [0], [0], [1], [0, 0, 1, 1], [], []>} : vector<2x16xf32>, vector<16x32xf32>, vector<2x32xf32> -> vector<2x32xf32>
    %cst_74 = arith.constant dense<0.000000e+00> : vector<2x32xf32>
    %236 = tpu.matmul %4, %224, %cst_74 {dimension_numbers = #tpu.dot_dimension_numbers<[1], [0], [0], [1], [0, 0, 1, 1], [], []>} : vector<2x14xf32>, vector<14x32xf32>, vector<2x32xf32> -> vector<2x32xf32>
    %237 = vector.broadcast %225 : vector<1x32xf32> to vector<2x32xf32>
    %238 = arith.addf %236, %237 : vector<2x32xf32>
    %239 = math.tanh %238 : vector<2x32xf32>
    %240 = vector.extract_strided_slice %226 {offsets = [0, 0], sizes = [1, 32], strides = [1, 1]} : vector<1x64xf32> to vector<1x32xf32>
    %241 = vector.broadcast %240 : vector<1x32xf32> to vector<2x32xf32>
    %242 = arith.mulf %235, %241 : vector<2x32xf32>
    %cst_75 = arith.constant dense<0.000000e+00> : vector<2xf32>
    %243 = vector.multi_reduction <add>, %242, %cst_75 [1] : vector<2x32xf32> to vector<2xf32>
    %244 = vector.shape_cast %243 : vector<2xf32> to vector<2x1xf32>
    %245 = vector.extract_strided_slice %226 {offsets = [0, 32], sizes = [1, 32], strides = [1, 1]} : vector<1x64xf32> to vector<1x32xf32>
    %246 = vector.broadcast %245 : vector<1x32xf32> to vector<2x32xf32>
    %247 = arith.mulf %239, %246 : vector<2x32xf32>
    %cst_76 = arith.constant dense<0.000000e+00> : vector<2xf32>
    %248 = vector.multi_reduction <add>, %247, %cst_76 [1] : vector<2x32xf32> to vector<2xf32>
    %249 = vector.shape_cast %248 : vector<2xf32> to vector<2x1xf32>
    %250 = arith.addf %244, %249 : vector<2x1xf32>
    %251 = vector.broadcast %227 : vector<1x1xf32> to vector<2x1xf32>
    %252 = arith.addf %250, %251 : vector<2x1xf32>
    %253 = arith.negf %252 : vector<2x1xf32>
    %254 = math.exp %253 : vector<2x1xf32>
    %cst_77 = arith.constant 1.000000e+00 : f32
    %255 = vector.broadcast %cst_77 : f32 to vector<2x1xf32>
    %256 = arith.addf %255, %254 : vector<2x1xf32>
    %257 = arith.divf %255, %256 : vector<2x1xf32>
    %c0_78 = arith.constant 0 : index
    %c8 = arith.constant 8 : index
    %258 = vector.load %arg3[%c0_78, %c8] : memref<8x128xf32, #tpu.memory_space<vmem>>, vector<2x1xf32>
    tpu.vector_store %arg3[%c0_78, %c8], %257 {strides = array<i32>} : memref<8x128xf32, #tpu.memory_space<vmem>>, vector<2x1xf32>,
    %cst_79 = arith.constant 0.000000e+00 : f32
    %259 = vector.broadcast %cst_79 : f32 to vector<2x1xf32>
    %260 = arith.maximumf %252, %259 : vector<2x1xf32>
    %261 = math.absf %252 : vector<2x1xf32>
    %cst_80 = arith.constant 0.000000e+00 : f32
    %262 = vector.broadcast %cst_80 : f32 to vector<2x1xf32>
    %263 = arith.subf %262, %261 : vector<2x1xf32>
    %264 = math.exp %263 : vector<2x1xf32>
    %cst_81 = arith.constant 1.000000e+00 : f32
    %265 = vector.broadcast %cst_81 : f32 to vector<2x1xf32>
    %266 = arith.addf %265, %264 : vector<2x1xf32>
    %267 = math.log %266 : vector<2x1xf32>
    %268 = arith.addf %260, %267 : vector<2x1xf32>
    %269 = arith.mulf %5, %252 : vector<2x1xf32>
    %270 = arith.subf %268, %269 : vector<2x1xf32>
    %cst_82 = arith.constant dense<0.000000e+00> : vector<1xf32>
    %271 = vector.multi_reduction <add>, %270, %cst_82 [0] : vector<2x1xf32> to vector<1xf32>
    %272 = vector.shape_cast %271 : vector<1xf32> to vector<1x1xf32>
    %cst_83 = arith.constant 2.000000e+00 : f32
    %273 = vector.broadcast %cst_83 : f32 to vector<1x1xf32>
    %274 = arith.divf %272, %273 : vector<1x1xf32>
    %c0_84 = arith.constant 0 : index
    %c9 = arith.constant 9 : index
    %275 = vector.load %arg3[%c0_84, %c9] : memref<8x128xf32, #tpu.memory_space<vmem>>, vector<1x1xf32>
    tpu.vector_store %arg3[%c0_84, %c9], %274 {strides = array<i32>} : memref<8x128xf32, #tpu.memory_space<vmem>>, vector<1x1xf32>,
    return
  }
  func.func @transform_0(%arg0: i32) -> (i32, i32) {
    %c0_i32 = arith.constant 0 : i32
    %c0_i32_0 = arith.constant 0 : i32
    %c0_i32_1 = arith.constant 0 : i32
    return %c0_i32, %c0_i32_0 : i32, i32
  }
  func.func @transform_1(%arg0: i32) -> (i32, i32) {
    %c0_i32 = arith.constant 0 : i32
    %c0_i32_0 = arith.constant 0 : i32
    %c0_i32_1 = arith.constant 0 : i32
    return %c0_i32, %c0_i32_0 : i32, i32
  }
  func.func @transform_2(%arg0: i32) -> (i32, i32) {
    %c0_i32 = arith.constant 0 : i32
    %c0_i32_0 = arith.constant 0 : i32
    %c0_i32_1 = arith.constant 0 : i32
    return %c0_i32, %c0_i32_0 : i32, i32
  }
}

</mosaic_0001>

<bundles_post_ra>
// kernel: model_forward.1
= control target key start
LH: loop header
LB: loop body
LE: loop exit
PB: predicated region body
PF: predicated region fallthrough
CT: control target
= control target key end

     0   :  { %7 = vsyncpa [#allocation3], 0  ;;  %s1122_s12 = smov [#allocation2]   ;;  %s1123_s14 = smov 128   ;;  %s1345_s0 = inlined_call_operand.hbm [shape: f32[344,128], index: 0, kind: input, shape index: {}]   ;;  %s1346_s1 = inlined_call_operand.vmem [shape: f32[40,128], index: 1, kind: input, shape index: {}]   ;;  %s1347_s2 = inlined_call_operand.vmem [shape: f32[8,128], index: 2, kind: output, shape index: {}]  }
   0x1   :  { %s12_s11 = sshll.u32 %s1345_s0, 4  ;;  %s14_s13 = sshll.u32 %s1122_s12, 4  ;;  %s13_s11 = int_to_ptr.hbm [resolvable:$true] %s12_s11  ;;  %s15_s13 = int_to_ptr.vmem [resolvable:$true] %s14_s13 }
   0x2   :  { %s1124_s15 = smov 8  }
   0x3   :  { %20 = dma.hbm_to_vmem [thread:$0]  %s13_s11, 5504, %s15_s13, [#allocation3], %s1123_s14, %s1123_s14, %s1124_s15  }
   0x4   :  { %1120 = dma.done.wait [#allocation3], 5504  }
   0x5   :  { %1121 = vsyncadd [#allocation3], 4294961792  ;;  %v36_v0 = vld [vmem:[#allocation2 + $0x18] sm:$0xff]  ;;  %v35_v1 = vld [vmem:[#allocation2 + $0x10] sm:$0xff]  ;;  %vm39_vm0 = vcmask 261120   ;;  %s1125_s19 = smov 96  }
   0x6   :  { %58 = vmatpush.msra.mxu0 %v36_v0  ;;  %v1010_v2 = vpack.i.bf16 %v35_v1, %v36_v0  ;;  %v34_v3 = vld [vmem:[#allocation2 + $0x8] sm:$0xff]  ;;  %v33_v4 = vld [vmem:[#allocation2] sm:$0xff]  ;;  %v1177_v16 = vld [vmem:[%s1346_s1 + $0x10] sm:$0xff]  ;;  %vm110_vm1 = vcmask 130048   ;;  %s1126_s24 = smov 32   ;;  %s1127_s25 = smov 64  }
   0x7   :  { %v1015_v5 = vpack.i.bf16 %v33_v4, %v34_v3  ;;  %v1157_v6 = vld [vmem:[%s1346_s1] sm:$0xff]  ;;  %v1164_v7 = vld [vmem:[%s1346_s1 + $0x8] sm:$0xff]  ;;  %v1184_v21 = vld [vmem:[%s1346_s1 + $0x18] sm:$0xff]  ;;  %v1128_v62 = vmov 32.0   ;;  %vm339_vm9 = vcmask 523264   ;;  %s1130_s30 = smov 120  }
   0x8   :  { %59 = vmatpush.msra.mxu0 %v35_v1  ;;  %v1035_v9 = vld [vmem:[#allocation2 + $0x20] ss:$0 sm:$0xff]  ;;  %s1131_s6 = smov 14   ;;  %s1132_s7 = smov 114  }
   0x9   :  { %s1134_s10 = smov 9  }
   0xa   :  { %60 = vmatpush.msra.mxu0 %v34_v3 }
   0xc   :  { %61 = vmatpush.msra.mxu0 %v33_v4 }
   0xd   :  { %959 = vmatmul.msk.f32.vlgmr.msra.gmra.mxu0 %vm39_vm0, %v1157_v6 }
  0x15   :  { %960 = vmatmul.msk.f32.gmra.mxu0 %vm39_vm0, %v1164_v7 }
  0x8a   :  { %v63_v8 = vpop.f32.mrf.mxu0 }
  0x8b   :  { %v64_v12 = vadd.f32 %v1035_v9, %v63_v8 }
  0x92   :  { %v66_v10 = vpop.f32.mrf.mxu0 }
  0x93   :  { %v67_v11 = vadd.f32 %v1035_v9, %v66_v10 }
  0x95   :  { %73 = vrot.lane.b32.xlu0 %v67_v11, %s1125_s19  ;;  %v1005_v35 = vpack.i.bf16 %v64_v12, %v67_v11 }
  0x9d   :  { %71 = vrot.lane.b32.xlu0 %v64_v12, %s1125_s19 }
 0x107   :  { %v74_v13 = vpop.permute.xlu0 %73 }
 0x108   :  { %961 = vmatpush.xpose.msk.msra.mxu1 %vm39_vm0, %v74_v13 }
 0x10f   :  { %v72_v14 = vpop.permute.xlu0 %71 }
 0x110   :  { %962 = vmatpush.xpose.msk.msra.mxu1 %vm39_vm0, %v72_v14 }
 0x113   :  { %963 = vmatmul.msk.f32.vlgmr.msra.gmra.mxu1 %vm39_vm0, %v64_v12 }
 0x11b   :  { %964 = vmatmul.msk.f32.gmra.mxu1 %vm39_vm0, %v67_v11 }
 0x190   :  { %v100_v15 = vpop.f32.mrf.mxu1 }
 0x191   :  { %v106_v17 = vmul.f32 0.17677669, %v100_v15  ;;  %v280_v15 = vld [vmem:[#allocation2 + $0x40] sm:$0xff] }
 0x193   :  { %v108_v18 = vadd.f32 %v106_v17, %v1177_v16  ;;  %v279_v17 = vld [vmem:[#allocation2 + $0x38] sm:$0xff] }
 0x195   :  { %v111_v19 = vsel %vm110_vm1, %v108_v18, -inf }
 0x196   :  { %112 = vmax.xlane.f32.xlu1 %v111_v19  ;;  %v277_v19 = vld [vmem:[#allocation2 + $0x28] sm:$0xff] }
 0x198   :  { %v103_v20 = vpop.f32.mrf.mxu1 }
 0x199   :  { %v107_v22 = vmul.f32 0.17677669, %v103_v20 }
 0x19b   :  { %v109_v23 = vadd.f32 %v107_v22, %v1184_v21 }
 0x19d   :  { %v114_v24 = vsel %vm110_vm1, %v109_v23, -inf }
 0x19e   :  { %115 = vmax.xlane.f32.xlu1 %v114_v24 }
 0x1b7   :  { %1011 = vrot.lane.b32.xlu1 %v1010_v2, %s1126_s24 }
 0x209   :  { %v113_v25 = vpop.xlane.xlu1 %112 }
 0x20a   :  { %v117_v26 = vsub.f32 %v108_v18, %v113_v25  ;;  %v278_v18 = vld [vmem:[#allocation2 + $0x30] sm:$0xff] }
 0x20c   :  { %v119_v27 = vmul.f32 1.442695, %v117_v26 }
 0x20e   :  { %1042 = vpow2.f32 %v119_v27 }
 0x211   :  { %v116_v28 = vpop.xlane.xlu1 %115 }
 0x212   :  { %v118_v29 = vsub.f32 %v109_v23, %v116_v28 }
 0x214   :  { %v1043_v30 = vpop.eup %1042  ;;  %v121_v31 = vmul.f32 1.442695, %v118_v29 }
 0x215   :  { %v123_v32 = vsel %vm110_vm1, %v1043_v30, 0.0 }
 0x216   :  { %1044 = vpow2.f32 %v121_v31  ;;  %124 = vadd.xlane.f32.xlu2 %v123_v32  ;;  %v1210_v32 = vld [vmem:[#allocation2 + $0x90] sm:$0x1f] }
 0x21c   :  { %v1045_v33 = vpop.eup %1044 }
 0x21d   :  { %v126_v34 = vsel %vm110_vm1, %v1045_v33, 0.0 }
 0x21e   :  { %127 = vadd.xlane.f32.xlu0 %v126_v34 }
 0x229   :  { %v1012_v37 = vpop.permute.xlu1 %1011 }
 0x22a   :  { %v1013_v38 = vunpack.i.l.bf16 %v1012_v37  ;;  %v1014_v39 = vunpack.i.h.bf16 %v1012_v37 }
 0x22c   :  { %206 = vmatpush.msra.mxu3 %v1013_v38 }
 0x22e   :  { %1006 = vrot.lane.b32.xlu2 %v1005_v35, %s1127_s25  ;;  %207 = vmatpush.msra.mxu3 %v1014_v39 }
 0x236   :  { %1016 = vrot.lane.b32.xlu2 %v1015_v5, %s1126_s24 }
 0x23e   :  { %185 = vrot.lane.b32.xlu2 %v1035_v9, %s1126_s24 }
 0x289   :  { %v125_v36 = vpop.xlane.xlu2 %124 }
 0x28a   :  { %1046 = vrcp.f32 %v125_v36  ;;  %v271_v36 = vperm.slane %v1210_v32, 0 }
 0x290   :  { %v1047_v42 = vpop.eup %1046 }
 0x291   :  { %v1007_v40 = vpop.permute.xlu2 %1006  ;;  %v128_v41 = vpop.xlane.xlu0 %127  ;;  %v131_v45 = vmul.f32 %v1047_v42, %v1043_v30 }
 0x292   :  { %v1008_v43 = vunpack.i.l.bf16 %v1007_v40  ;;  %1048 = vrcp.f32 %v128_v41  ;;  %v1009_v44 = vunpack.i.h.bf16 %v1007_v40  ;;  %v274_v40 = vperm.slane %v1210_v32, 1 }
 0x293   :  { %1050 = vrcp.f32 %v1128_v62 }
 0x294   :  { %159 = vmatpush.msra.mxu2 %v1008_v43 }
 0x296   :  { %160 = vmatpush.msra.mxu2 %v1009_v44 }
 0x297   :  { %965 = vmatmul.msk.f32.vlgmr.msra.gmra.mxu2 %vm110_vm1, %v131_v45 }
 0x298   :  { %v1049_v47 = vpop.eup %1048  ;;  %301 = vmatpush.msrb.mxu2 %v280_v15 }
 0x299   :  { %v1017_v46 = vpop.permute.xlu2 %1016  ;;  %v132_v50 = vmul.f32 %v1049_v47, %v1045_v33  ;;  %v1051_v63 = vpop.eup %1050 }
 0x29a   :  { %v1018_v48 = vunpack.i.l.bf16 %v1017_v46  ;;  %v1019_v49 = vunpack.i.h.bf16 %v1017_v46  ;;  %v227_v0 = vmul.f32 32.0, %v1051_v63  ;;  %vm231_vm2 = vweird.f32 %v1051_v63  ;;  %302 = vmatpush.msrb.mxu2 %v279_v17 }
 0x29c   :  { %208 = vmatpush.msra.mxu3 %v1018_v48  ;;  %v228_v1 = vsub.f32 1.0, %v227_v0  ;;  %303 = vmatpush.msrb.mxu2 %v278_v18 }
 0x29e   :  { %209 = vmatpush.msra.mxu3 %v1019_v49  ;;  %v229_v2 = vmul.f32 %v1051_v63, %v228_v1  ;;  %304 = vmatpush.msrb.mxu2 %v277_v19  ;;  %v338_v19 = vperm.slane %v1210_v32, 2 }
 0x29f   :  { %966 = vmatmul.msk.f32.gmra.mxu2 %vm110_vm1, %v132_v50  ;;  %v337_v50 = vld [vmem:[#allocation2 + $0x88] sm:$0xff] }
 0x2a0   :  { %v230_v3 = vadd.f32 %v1051_v63, %v229_v2  ;;  %354 = vmatpush.msrb.mxu0 %v337_v50 }
 0x2a1   :  { %v186_v53 = vpop.permute.xlu2 %185 }
 0x2a2   :  { %v1202_v4 = vsel %vm231_vm2, %v1051_v63, %v230_v3  ;;  %vm519_vm2 = vcmask 57344  }
 0x31a   :  { %v162_v51 = vpop.f32.mrf.mxu2 }
 0x31b   :  { %967 = vmatmul.msk.f32.vlgmr.msra.gmra.mxu3 %vm39_vm0, %v162_v51  ;;  %v336_v51 = vld [vmem:[#allocation2 + $0x80] sm:$0xff] }
 0x31c   :  { %355 = vmatpush.msrb.mxu0 %v336_v51 }
 0x322   :  { %v165_v52 = vpop.f32.mrf.mxu2 }
 0x323   :  { %968 = vmatmul.msk.f32.gmra.mxu3 %vm39_vm0, %v165_v52  ;;  %v335_v52 = vld [vmem:[#allocation2 + $0x78] sm:$0xff] }
 0x324   :  { %356 = vmatpush.msrb.mxu0 %v335_v52 }
 0x39e   :  { %v211_v54 = vpop.f32.mrf.mxu3 }
 0x39f   :  { %v212_v55 = vadd.f32 %v211_v54, %v186_v53  ;;  %v333_v54 = vld [vmem:[#allocation2 + $0x68] sm:$0xff] }
 0x3a1   :  { %v218_v56 = vadd.f32 %v212_v55, %v1157_v6  ;;  %v332_v55 = vld [vmem:[#allocation2 + $0x60] sm:$0xff] }
 0x3a3   :  { %v220_v57 = vsel %vm39_vm0, %v218_v56, 0.0 }
 0x3a4   :  { %221 = vadd.xlane.f32.xlu1 %v220_v57  ;;  %v330_v57 = vld [vmem:[#allocation2 + $0x50] sm:$0xff] }
 0x3a6   :  { %v214_v58 = vpop.f32.mrf.mxu3 }
 0x3a7   :  { %v215_v59 = vadd.f32 %v214_v58, %v186_v53  ;;  %v334_v53 = vld [vmem:[#allocation2 + $0x70] sm:$0xff]  ;;  %v1036_v58 = vld [vmem:[#allocation2 + $0x48] ss:$0 sm:$0xff] }
 0x3a8   :  { %357 = vmatpush.msrb.mxu0 %v334_v53 }
 0x3a9   :  { %v219_v60 = vadd.f32 %v215_v59, %v1164_v7 }
 0x3aa   :  { %358 = vmatpush.msrb.mxu0 %v333_v54 }
 0x3ab   :  { %v223_v61 = vsel %vm39_vm0, %v219_v60, 0.0 }
 0x3ac   :  { %224 = vadd.xlane.f32.xlu2 %v223_v61  ;;  %359 = vmatpush.msrb.mxu0 %v332_v55 }
 0x417   :  { %v222_v5 = vpop.xlane.xlu1 %221 }
 0x418   :  { %v233_v6 = vmul.f32 %v1202_v4, %v222_v5 }
 0x41a   :  { %v235_v8 = vsub.f32 %v218_v56, %v233_v6  ;;  %v331_v56 = vld [vmem:[#allocation2 + $0x58] sm:$0xff] }
 0x41b   :  { %360 = vmatpush.msrb.mxu0 %v331_v56 }
 0x41c   :  { %v237_v9 = vmul.f32 %v235_v8, %v235_v8 }
 0x41d   :  { %361 = vmatpush.msrb.mxu0 %v330_v57 }
 0x41e   :  { %v239_v7 = vsel %vm39_vm0, %v237_v9, 0.0 }
 0x41f   :  { %v225_v10 = vpop.xlane.xlu2 %224  ;;  %240 = vadd.xlane.f32.xlu0 %v239_v7 }
 0x420   :  { %v234_v11 = vmul.f32 %v1202_v4, %v225_v10 }
 0x422   :  { %v236_v12 = vsub.f32 %v219_v60, %v234_v11 }
 0x424   :  { %v238_v13 = vmul.f32 %v236_v12, %v236_v12 }
 0x426   :  { %v242_v14 = vsel %vm39_vm0, %v238_v13, 0.0 }
 0x427   :  { %243 = vadd.xlane.f32.xlu0 %v242_v14 }
 0x492   :  { %v241_v20 = vpop.xlane.xlu0 %240 }
 0x493   :  { %v245_v22 = vmul.f32 %v241_v20, %v1202_v4 }
 0x495   :  { %v247_v23 = vadd.f32 1e-05, %v245_v22 }
 0x497   :  { %1052 = vrsqrt.f32 %v247_v23  ;;  %vm255_vm4 = vweird.f32 %v247_v23 }
 0x49a   :  { %v244_v24 = vpop.xlane.xlu0 %243 }
 0x49b   :  { %v246_v25 = vmul.f32 %v244_v24, %v1202_v4 }
 0x49d   :  { %v1053_v26 = vpop.eup %1052  ;;  %v248_v27 = vadd.f32 1e-05, %v246_v25 }
 0x49e   :  { %v250_v28 = vmul.f32 %v1053_v26, %v247_v23  ;;  %vm256_vm3 = vweird.f32 %v1053_v26 }
 0x49f   :  { %1054 = vrsqrt.f32 %v248_v27  ;;  %vm257_vm5 = vmor %vm255_vm4, %vm256_vm3  ;;  %vm265_vm7 = vweird.f32 %v248_v27 }
 0x4a0   :  { %v251_v29 = vmul.f32 %v1053_v26, %v250_v28 }
 0x4a2   :  { %v252_v30 = vmul.f32 0.5, %v251_v29 }
 0x4a4   :  { %v253_v31 = vsub.f32 1.5, %v252_v30 }
 0x4a5   :  { %v1055_v33 = vpop.eup %1054 }
 0x4a6   :  { %v254_v34 = vmul.f32 %v1053_v26, %v253_v31  ;;  %v260_v35 = vmul.f32 %v1055_v33, %v248_v27  ;;  %vm266_vm6 = vweird.f32 %v1055_v33 }
 0x4a7   :  { %vm267_vm8 = vmor %vm265_vm7, %vm266_vm6 }
 0x4a8   :  { %v258_v37 = vsel %vm257_vm5, %v1053_v26, %v254_v34  ;;  %v261_v38 = vmul.f32 %v1055_v33, %v260_v35 }
 0x4a9   :  { %v269_v39 = vmul.f32 %v258_v37, %v235_v8 }
 0x4aa   :  { %v262_v41 = vmul.f32 0.5, %v261_v38 }
 0x4ab   :  { %v272_v42 = vmul.f32 %v271_v36, %v269_v39 }
 0x4ac   :  { %v263_v43 = vsub.f32 1.5, %v262_v41  ;;  %v1228_v41 = vld [vmem:[#allocation2 + $0xa8] sm:$0xff] }
 0x4ad   :  { %v275_v44 = vadd.f32 %v274_v40, %v272_v42  ;;  %v1231_v42 = vld [vmem:[#allocation2 + $0xa0] sm:$0xff] }
 0x4ae   :  { %v264_v45 = vmul.f32 %v1055_v33, %v263_v43  ;;  %v1234_v43 = vld [vmem:[#allocation2 + $0x98] sm:$0xff] }
 0x4af   :  { %969 = vmatmul.msk.f32.vlgmr.msrb.gmra.mxu2 %vm39_vm0, %v275_v44 }
 0x4b0   :  { %v268_v46 = vsel %vm267_vm8, %v1055_v33, %v264_v45  ;;  %v1030_v45 = vpack.i.bf16 %v1234_v43, %v1231_v42 }
 0x4b1   :  { %v270_v47 = vmul.f32 %v268_v46, %v236_v12 }
 0x4b3   :  { %v273_v48 = vmul.f32 %v271_v36, %v270_v47 }
 0x4b5   :  { %v276_v49 = vadd.f32 %v274_v40, %v273_v48  ;;  %v1225_v40 = vld [vmem:[#allocation2 + $0xb0] sm:$0xff] }
 0x4b6   :  { %445 = vmatpush.msrb.mxu1 %v1225_v40 }
 0x4b7   :  { %970 = vmatmul.msk.f32.gmra.mxu2 %vm39_vm0, %v276_v49 }
 0x4b8   :  { %446 = vmatpush.msrb.mxu1 %v1228_v41 }
 0x4ba   :  { %447 = vmatpush.msrb.mxu1 %v1231_v42 }
 0x4bc   :  { %448 = vmatpush.msrb.mxu1 %v1234_v43 }
 0x532   :  { %v306_v59 = vpop.f32.mrf.mxu2 }
 0x533   :  { %v307_v60 = vadd.f32 %v1036_v58, %v306_v59 }
 0x535   :  { %v312_v61 = vmul.f32 %v307_v60, %v307_v60 }
 0x537   :  { %v314_v62 = vmul.f32 %v312_v61, %v307_v60 }
 0x539   :  { %v316_v63 = vmul.f32 0.044715, %v314_v62 }
 0x53a   :  { %v309_v0 = vpop.f32.mrf.mxu2 }
 0x53b   :  { %v318_v1 = vadd.f32 %v316_v63, %v307_v60  ;;  %v310_v2 = vadd.f32 %v1036_v58, %v309_v0  ;;  %v418_v0 = vperm.slane %v1210_v32, 4 }
 0x53d   :  { %v320_v3 = vmul.f32 0.7978846, %v318_v1  ;;  %v313_v5 = vmul.f32 %v310_v2, %v310_v2 }
 0x53f   :  { %1056 = vtanh.f32 %v320_v3  ;;  %v315_v6 = vmul.f32 %v313_v5, %v310_v2 }
 0x541   :  { %v317_v8 = vmul.f32 0.044715, %v315_v6 }
 0x543   :  { %v319_v9 = vadd.f32 %v317_v8, %v310_v2 }
 0x545   :  { %v1057_v7 = vpop.eup %1056  ;;  %v321_v10 = vmul.f32 0.7978846, %v319_v9 }
 0x546   :  { %v324_v11 = vadd.f32 1.0, %v1057_v7 }
 0x547   :  { %1058 = vtanh.f32 %v321_v10 }
 0x548   :  { %v326_v12 = vmul.f32 0.5, %v324_v11 }
 0x54a   :  { %v328_v13 = vmul.f32 %v326_v12, %v307_v60  ;;  %v415_v60 = vperm.slane %v1210_v32, 3  ;;  %v1037_v32 = vld [vmem:[#allocation2 + $0xb8] ss:$0 sm:$0xff] }
 0x54c   :  { %971 = vmatmul.msk.f32.vlgmr.msrb.gmra.mxu0 %vm339_vm9, %v328_v13 }
 0x54d   :  { %v1059_v14 = vpop.eup %1058 }
 0x54e   :  { %v325_v15 = vadd.f32 1.0, %v1059_v14 }
 0x550   :  { %v327_v17 = vmul.f32 0.5, %v325_v15 }
 0x552   :  { %v329_v18 = vmul.f32 %v327_v17, %v310_v2 }
 0x554   :  { %972 = vmatmul.msk.f32.gmra.mxu0 %vm339_vm9, %v329_v18 }
 0x5c9   :  { %v363_v20 = vpop.f32.mrf.mxu0 }
 0x5ca   :  { %v364_v22 = vadd.f32 %v363_v20, %v338_v19 }
 0x5cc   :  { %v369_v23 = vadd.f32 %v364_v22, %v275_v44  ;;  %v1025_v44 = vpack.i.bf16 %v1228_v41, %v1225_v40  ;;  %v1129_v40 = vmov 0.0  }
 0x5cd   :  { %27 = vst [vmem:[%s1347_s2] sm:$0xff] %v1129_v40 }
 0x5ce   :  { %v371_v24 = vsel %vm39_vm0, %v369_v23, 0.0 }
 0x5cf   :  { %372 = vadd.xlane.f32.xlu0 %v371_v24 }
 0x5d1   :  { %v366_v25 = vpop.f32.mrf.mxu0 }
 0x5d2   :  { %v367_v26 = vadd.f32 %v366_v25, %v338_v19 }
 0x5d4   :  { %v370_v27 = vadd.f32 %v367_v26, %v276_v49 }
 0x5d6   :  { %v374_v28 = vsel %vm39_vm0, %v370_v27, 0.0 }
 0x5d7   :  { %375 = vadd.xlane.f32.xlu0 %v374_v28 }
 0x642   :  { %v373_v29 = vpop.xlane.xlu0 %372 }
 0x643   :  { %v377_v30 = vmul.f32 %v373_v29, %v1202_v4 }
 0x645   :  { %v379_v31 = vsub.f32 %v369_v23, %v377_v30 }
 0x647   :  { %v381_v33 = vmul.f32 %v379_v31, %v379_v31 }
 0x649   :  { %v383_v34 = vsel %vm39_vm0, %v381_v33, 0.0 }
 0x64a   :  { %384 = vadd.xlane.f32.xlu1 %v383_v34  ;;  %v376_v35 = vpop.xlane.xlu0 %375 }
 0x64b   :  { %v378_v36 = vmul.f32 %v376_v35, %v1202_v4 }
 0x64d   :  { %v380_v37 = vsub.f32 %v370_v27, %v378_v36 }
 0x64f   :  { %v382_v38 = vmul.f32 %v380_v37, %v380_v37 }
 0x651   :  { %v386_v39 = vsel %vm39_vm0, %v382_v38, 0.0 }
 0x652   :  { %387 = vadd.xlane.f32.xlu2 %v386_v39 }
 0x6bd   :  { %v385_v46 = vpop.xlane.xlu1 %384 }
 0x6be   :  { %v389_v47 = vmul.f32 %v385_v46, %v1202_v4 }
 0x6c0   :  { %v391_v48 = vadd.f32 1e-05, %v389_v47 }
 0x6c2   :  { %1060 = vrsqrt.f32 %v391_v48  ;;  %vm399_vm11 = vweird.f32 %v391_v48 }
 0x6c5   :  { %v388_v49 = vpop.xlane.xlu2 %387 }
 0x6c6   :  { %v390_v50 = vmul.f32 %v388_v49, %v1202_v4 }
 0x6c8   :  { %v1061_v51 = vpop.eup %1060  ;;  %v392_v52 = vadd.f32 1e-05, %v390_v50 }
 0x6c9   :  { %v394_v53 = vmul.f32 %v1061_v51, %v391_v48  ;;  %vm400_vm10 = vweird.f32 %v1061_v51 }
 0x6ca   :  { %1062 = vrsqrt.f32 %v392_v52  ;;  %vm401_vm12 = vmor %vm399_vm11, %vm400_vm10  ;;  %vm409_vm14 = vweird.f32 %v392_v52 }
 0x6cb   :  { %v395_v54 = vmul.f32 %v1061_v51, %v394_v53 }
 0x6cd   :  { %v396_v55 = vmul.f32 0.5, %v395_v54 }
 0x6cf   :  { %v397_v56 = vsub.f32 1.5, %v396_v55 }
 0x6d0   :  { %v1063_v57 = vpop.eup %1062 }
 0x6d1   :  { %v398_v58 = vmul.f32 %v1061_v51, %v397_v56  ;;  %v404_v59 = vmul.f32 %v1063_v57, %v392_v52  ;;  %vm410_vm13 = vweird.f32 %v1063_v57 }
 0x6d2   :  { %vm411_vm15 = vmor %vm409_vm14, %vm410_vm13 }
 0x6d3   :  { %v402_v61 = vsel %vm401_vm12, %v1061_v51, %v398_v58  ;;  %v405_v62 = vmul.f32 %v1063_v57, %v404_v59 }
 0x6d4   :  { %v413_v63 = vmul.f32 %v402_v61, %v379_v31 }
 0x6d5   :  { %v406_v1 = vmul.f32 0.5, %v405_v62 }
 0x6d6   :  { %v416_v2 = vmul.f32 %v415_v60, %v413_v63 }
 0x6d7   :  { %v407_v3 = vsub.f32 1.5, %v406_v1 }
 0x6d8   :  { %v1245_v5 = vadd.f32 %v418_v0, %v416_v2 }
 0x6d9   :  { %v408_v6 = vmul.f32 %v1063_v57, %v407_v3 }
 0x6da   :  { %973 = vmatmul.msk.f32.vlgmr.msrb.gmra.mxu1 %vm39_vm0, %v1245_v5 }
 0x6db   :  { %v412_v8 = vsel %vm411_vm15, %v1063_v57, %v408_v6 }
 0x6dc   :  { %v414_v9 = vmul.f32 %v412_v8, %v380_v37 }
 0x6de   :  { %v417_v7 = vmul.f32 %v415_v60, %v414_v9 }
 0x6e0   :  { %v1249_v10 = vadd.f32 %v418_v0, %v417_v7 }
 0x6e2   :  { %974 = vmatmul.msk.f32.gmra.mxu1 %vm39_vm0, %v1249_v10 }
 0x757   :  { %v450_v11 = vpop.f32.mrf.mxu1 }
 0x758   :  { %v451_v12 = vadd.f32 %v1037_v32, %v450_v11  ;;  %v664_v11 = vld [vmem:[#allocation2 + $0xd0] sm:$0xff] }
 0x75a   :  { %458 = vrot.lane.b32.xlu1 %v451_v12, %s1125_s19 }
 0x75f   :  { %v453_v13 = vpop.f32.mrf.mxu1 }
 0x760   :  { %v454_v14 = vadd.f32 %v1037_v32, %v453_v13  ;;  %v662_v13 = vld [vmem:[#allocation2 + $0xc0] sm:$0xff] }
 0x762   :  { %460 = vrot.lane.b32.xlu0 %v454_v14, %s1125_s19  ;;  %v1020_v27 = vpack.i.bf16 %v451_v12, %v454_v14 }
 0x7cc   :  { %v459_v17 = vpop.permute.xlu1 %458 }
 0x7d4   :  { %v461_v15 = vpop.permute.xlu0 %460 }
 0x7d5   :  { %975 = vmatpush.xpose.msk.msrb.mxu3 %vm39_vm0, %v461_v15 }
 0x7d9   :  { %976 = vmatpush.xpose.msk.msrb.mxu3 %vm39_vm0, %v459_v17 }
 0x7dc   :  { %977 = vmatmul.msk.f32.vlgmr.msrb.gmra.mxu3 %vm39_vm0, %v451_v12  ;;  %v663_v12 = vld [vmem:[#allocation2 + $0xc8] sm:$0xff] }
 0x7e4   :  { %978 = vmatmul.msk.f32.gmra.mxu3 %vm39_vm0, %v454_v14 }
 0x85f   :  { %v487_v18 = vpop.f32.mrf.mxu3 }
 0x860   :  { %v493_v19 = vmul.f32 0.17677669, %v487_v18 }
 0x862   :  { %v495_v20 = vadd.f32 %v493_v19, %v1177_v16 }
 0x864   :  { %v497_v22 = vsel %vm110_vm1, %v495_v20, -inf }
 0x865   :  { %498 = vmax.xlane.f32.xlu2 %v497_v22 }
 0x867   :  { %v490_v23 = vpop.f32.mrf.mxu3 }
 0x868   :  { %v494_v24 = vmul.f32 0.17677669, %v490_v23 }
 0x86a   :  { %v496_v25 = vadd.f32 %v494_v24, %v1184_v21 }
 0x86c   :  { %v500_v26 = vsel %vm110_vm1, %v496_v25, -inf }
 0x86d   :  { %501 = vmax.xlane.f32.xlu2 %v500_v26  ;;  %v1300_v26 = vld [vmem:[#allocation2 + $0x128] sm:$0x1f] }
 0x885   :  { %1021 = vrot.lane.b32.xlu2 %v1020_v27, %s1127_s25 }
 0x88d   :  { %1026 = vrot.lane.b32.xlu2 %v1025_v44, %s1126_s24 }
 0x895   :  { %1031 = vrot.lane.b32.xlu2 %v1030_v45, %s1126_s24 }
 0x8d8   :  { %v499_v16 = vpop.xlane.xlu2 %498 }
 0x8d9   :  { %v503_v28 = vsub.f32 %v495_v20, %v499_v16 }
 0x8db   :  { %v505_v29 = vmul.f32 1.442695, %v503_v28 }
 0x8dd   :  { %1064 = vpow2.f32 %v505_v29 }
 0x8e0   :  { %v502_v21 = vpop.xlane.xlu2 %501 }
 0x8e1   :  { %v504_v30 = vsub.f32 %v496_v25, %v502_v21  ;;  %v656_v21 = vperm.slane %v1300_v26, 0 }
 0x8e3   :  { %v1065_v31 = vpop.eup %1064  ;;  %v507_v33 = vmul.f32 1.442695, %v504_v30 }
 0x8e4   :  { %v509_v34 = vsel %vm110_vm1, %v1065_v31, 0.0 }
 0x8e5   :  { %1066 = vpow2.f32 %v507_v33  ;;  %510 = vadd.xlane.f32.xlu0 %v509_v34  ;;  %v659_v34 = vperm.slane %v1300_v26, 1 }
 0x8e8   :  { %v1022_v35 = vpop.permute.xlu2 %1021 }
 0x8e9   :  { %v1023_v36 = vunpack.i.l.bf16 %v1022_v35  ;;  %v1024_v38 = vunpack.i.h.bf16 %v1022_v35 }
 0x8eb   :  { %v1067_v37 = vpop.eup %1066  ;;  %551 = vmatpush.msra.mxu2 %v1023_v36 }
 0x8ec   :  { %v512_v39 = vsel %vm110_vm1, %v1067_v37, 0.0 }
 0x8ed   :  { %513 = vadd.xlane.f32.xlu1 %v512_v39  ;;  %552 = vmatpush.msra.mxu2 %v1024_v38 }
 0x8f0   :  { %v1027_v41 = vpop.permute.xlu2 %1026 }
 0x8f1   :  { %v1029_v42 = vunpack.i.h.bf16 %v1027_v41  ;;  %v1028_v43 = vunpack.i.l.bf16 %v1027_v41 }
 0x8f3   :  { %598 = vmatpush.msra.mxu0 %v1028_v43 }
 0x8f5   :  { %599 = vmatpush.msra.mxu0 %v1029_v42 }
 0x8f8   :  { %v1032_v44 = vpop.permute.xlu2 %1031 }
 0x8f9   :  { %577 = vrot.lane.b32.xlu0 %v1037_v32, %s1126_s24  ;;  %v1034_v45 = vunpack.i.h.bf16 %v1032_v44  ;;  %v1033_v46 = vunpack.i.l.bf16 %v1032_v44 }
 0x8fb   :  { %600 = vmatpush.msra.mxu0 %v1033_v46  ;;  %v721_v46 = vld [vmem:[#allocation2 + $0x118] sm:$0xff] }
 0x8fd   :  { %601 = vmatpush.msra.mxu0 %v1034_v45  ;;  %v722_v45 = vld [vmem:[#allocation2 + $0x120] sm:$0xff] }
 0x8fe   :  { %738 = vmatpush.msra.mxu3 %v722_v45 }
 0x900   :  { %739 = vmatpush.msra.mxu3 %v721_v46 }
 0x958   :  { %v511_v47 = vpop.xlane.xlu0 %510 }
 0x959   :  { %1068 = vrcp.f32 %v511_v47  ;;  %v720_v47 = vld [vmem:[#allocation2 + $0x110] sm:$0xff] }
 0x95a   :  { %740 = vmatpush.msra.mxu3 %v720_v47 }
 0x95f   :  { %v1069_v48 = vpop.eup %1068 }
 0x960   :  { %v517_v49 = vmul.f32 %v1069_v48, %v1065_v31  ;;  %v514_v50 = vpop.xlane.xlu1 %513  ;;  %v719_v48 = vld [vmem:[#allocation2 + $0x108] sm:$0xff] }
 0x961   :  { %1070 = vrcp.f32 %v514_v50  ;;  %741 = vmatpush.msra.mxu3 %v719_v48  ;;  %v717_v50 = vld [vmem:[#allocation2 + $0xf8] sm:$0xff] }
 0x962   :  { %979 = vmatmul.msk.f32.vlgmr.msra.gmra.mxu2 %vm110_vm1, %v517_v49  ;;  %520 = vst.msk [vmem:[%s1347_s2] sm:$0x1] %vm519_vm2, %v517_v49  ;;  %v718_v49 = vld [vmem:[#allocation2 + $0x100] sm:$0xff] }
 0x963   :  { %742 = vmatpush.msra.mxu3 %v718_v49 }
 0x965   :  { %743 = vmatpush.msra.mxu3 %v717_v50 }
 0x967   :  { %v1071_v51 = vpop.eup %1070 }
 0x968   :  { %v1284_v52 = vmul.f32 %v1071_v51, %v1067_v37  ;;  %v716_v51 = vld [vmem:[#allocation2 + $0xf0] sm:$0xff] }
 0x969   :  { %744 = vmatpush.msra.mxu3 %v716_v51 }
 0x96a   :  { %980 = vmatmul.msk.f32.gmra.mxu2 %vm110_vm1, %v1284_v52 }
 0x96b   :  { %v578_v55 = vpop.permute.xlu0 %577 }
 0x9e5   :  { %v554_v53 = vpop.f32.mrf.mxu2 }
 0x9e6   :  { %981 = vmatmul.msk.f32.vlgmr.msra.gmra.mxu0 %vm39_vm0, %v554_v53  ;;  %v715_v53 = vld [vmem:[#allocation2 + $0xe8] sm:$0xff] }
 0x9e7   :  { %745 = vmatpush.msra.mxu3 %v715_v53  ;;  %v810_v53 = vlaneseq }
 0x9ed   :  { %v557_v54 = vpop.f32.mrf.mxu2 }
 0x9ee   :  { %982 = vmatmul.msk.f32.gmra.mxu0 %vm39_vm0, %v557_v54  ;;  %v1038_v54 = vld [vmem:[#allocation2 + $0xe0] ss:$0 sm:$0xff] }
 0xa63   :  { %v603_v56 = vpop.f32.mrf.mxu0 }
 0xa64   :  { %v604_v57 = vadd.f32 %v603_v56, %v578_v55 }
 0xa66   :  { %v610_v58 = vadd.f32 %v604_v57, %v1245_v5 }
 0xa68   :  { %v612_v59 = vsel %vm39_vm0, %v610_v58, 0.0 }
 0xa69   :  { %613 = vadd.xlane.f32.xlu2 %v612_v59 }
 0xa6b   :  { %v606_v60 = vpop.f32.mrf.mxu0 }
 0xa6c   :  { %v607_v61 = vadd.f32 %v606_v60, %v578_v55 }
 0xa6e   :  { %v611_v62 = vadd.f32 %v607_v61, %v1249_v10  ;;  %v665_v10 = vld [vmem:[#allocation2 + $0xd8] sm:$0xff] }
 0xa6f   :  { %686 = vmatpush.msra.mxu1 %v665_v10 }
 0xa70   :  { %v615_v63 = vsel %vm39_vm0, %v611_v62, 0.0 }
 0xa71   :  { %616 = vadd.xlane.f32.xlu1 %v615_v63  ;;  %687 = vmatpush.msra.mxu1 %v664_v11 }
 0xa73   :  { %688 = vmatpush.msra.mxu1 %v663_v12 }
 0xa75   :  { %689 = vmatpush.msra.mxu1 %v662_v13 }
 0xadc   :  { %v614_v0 = vpop.xlane.xlu2 %613 }
 0xadd   :  { %v618_v1 = vmul.f32 %v614_v0, %v1202_v4 }
 0xadf   :  { %v620_v2 = vsub.f32 %v610_v58, %v618_v1 }
 0xae1   :  { %v622_v3 = vmul.f32 %v620_v2, %v620_v2 }
 0xae3   :  { %v624_v6 = vsel %vm39_vm0, %v622_v3, 0.0 }
 0xae4   :  { %625 = vadd.xlane.f32.xlu1 %v624_v6  ;;  %v617_v8 = vpop.xlane.xlu1 %616 }
 0xae5   :  { %v619_v5 = vmul.f32 %v617_v8, %v1202_v4 }
 0xae7   :  { %v621_v9 = vsub.f32 %v611_v62, %v619_v5 }
 0xae9   :  { %v623_v7 = vmul.f32 %v621_v9, %v621_v9 }
 0xaeb   :  { %v627_v32 = vsel %vm39_vm0, %v623_v7, 0.0 }
 0xaec   :  { %628 = vadd.xlane.f32.xlu0 %v627_v32 }
 0xb57   :  { %v626_v14 = vpop.xlane.xlu1 %625 }
 0xb58   :  { %v630_v15 = vmul.f32 %v626_v14, %v1202_v4  ;;  %v723_v14 = vperm.slane %v1300_v26, 2 }
 0xb5a   :  { %v632_v17 = vadd.f32 1e-05, %v630_v15 }
 0xb5c   :  { %1072 = vrsqrt.f32 %v632_v17  ;;  %vm640_vm4 = vweird.f32 %v632_v17 }
 0xb5f   :  { %v629_v18 = vpop.xlane.xlu0 %628 }
 0xb60   :  { %v631_v19 = vmul.f32 %v629_v18, %v1202_v4 }
 0xb62   :  { %v1073_v20 = vpop.eup %1072  ;;  %v633_v22 = vadd.f32 1e-05, %v631_v19 }
 0xb63   :  { %v635_v23 = vmul.f32 %v1073_v20, %v632_v17  ;;  %vm641_vm3 = vweird.f32 %v1073_v20 }
 0xb64   :  { %1074 = vrsqrt.f32 %v633_v22  ;;  %vm642_vm5 = vmor %vm640_vm4, %vm641_vm3  ;;  %vm650_vm7 = vweird.f32 %v633_v22  ;;  %vm873_vm4 = vcmask 254976  }
 0xb65   :  { %v636_v24 = vmul.f32 %v1073_v20, %v635_v23 }
 0xb67   :  { %v637_v25 = vmul.f32 0.5, %v636_v24 }
 0xb69   :  { %v638_v27 = vsub.f32 1.5, %v637_v25 }
 0xb6a   :  { %v1075_v16 = vpop.eup %1074 }
 0xb6b   :  { %v639_v28 = vmul.f32 %v1073_v20, %v638_v27  ;;  %v645_v29 = vmul.f32 %v1075_v16, %v633_v22  ;;  %vm651_vm6 = vweird.f32 %v1075_v16 }
 0xb6c   :  { %vm652_vm8 = vmor %vm650_vm7, %vm651_vm6  ;;  %vm911_vm7 = vcmask 66624  }
 0xb6d   :  { %v643_v30 = vsel %vm642_vm5, %v1073_v20, %v639_v28  ;;  %v646_v31 = vmul.f32 %v1075_v16, %v645_v29 }
 0xb6e   :  { %v654_v33 = vmul.f32 %v643_v30, %v620_v2 }
 0xb6f   :  { %v647_v35 = vmul.f32 0.5, %v646_v31 }
 0xb70   :  { %v657_v36 = vmul.f32 %v656_v21, %v654_v33 }
 0xb71   :  { %v648_v37 = vsub.f32 1.5, %v647_v35 }
 0xb72   :  { %v660_v38 = vadd.f32 %v659_v34, %v657_v36 }
 0xb73   :  { %v649_v39 = vmul.f32 %v1075_v16, %v648_v37  ;;  %v806_v37 = vld [vmem:[#allocation2 + $0x138] sm:$0x3f] }
 0xb74   :  { %983 = vmatmul.msk.f32.vlgmr.msra.gmra.mxu1 %vm39_vm0, %v660_v38 }
 0xb75   :  { %v653_v41 = vsel %vm652_vm8, %v1075_v16, %v649_v39  ;;  %v805_v39 = vld [vmem:[#allocation2 + $0x130] sm:$0xff]  ;;  %vm932_vm8 = vcmask 1024  }
 0xb76   :  { %v655_v42 = vmul.f32 %v653_v41, %v621_v9  ;;  %v1324_v41 = vld [vmem:[%s1346_s1 + $0x20] sm:$0x3] }
 0xb78   :  { %v658_v43 = vmul.f32 %v656_v21, %v655_v42 }
 0xb7a   :  { %v661_v44 = vadd.f32 %v659_v34, %v658_v43  ;;  %v1315_v34 = vld [vmem:[#allocation2 + $0x148] ss:$0 sm:$0xff] }
 0xb7c   :  { %984 = vmatmul.msk.f32.gmra.mxu1 %vm39_vm0, %v661_v44 }
 0xbf1   :  { %v691_v55 = vpop.f32.mrf.mxu1 }
 0xbf2   :  { %v692_v56 = vadd.f32 %v1038_v54, %v691_v55 }
 0xbf4   :  { %v697_v57 = vmul.f32 %v692_v56, %v692_v56 }
 0xbf6   :  { %v699_v58 = vmul.f32 %v697_v57, %v692_v56 }
 0xbf8   :  { %v701_v59 = vmul.f32 0.044715, %v699_v58 }
 0xbf9   :  { %v694_v60 = vpop.f32.mrf.mxu1 }
 0xbfa   :  { %v703_v61 = vadd.f32 %v701_v59, %v692_v56  ;;  %v695_v62 = vadd.f32 %v1038_v54, %v694_v60  ;;  %v799_v54 = vperm.slane %v1300_v26, 3  ;;  %v813_v60 = vshrl.u32 %v810_v53, 7 }
 0xbfc   :  { %v705_v63 = vmul.f32 0.7978846, %v703_v61  ;;  %v698_v0 = vmul.f32 %v695_v62, %v695_v62 }
 0xbfe   :  { %1076 = vtanh.f32 %v705_v63  ;;  %v700_v1 = vmul.f32 %v698_v0, %v695_v62 }
 0xc00   :  { %v702_v2 = vmul.f32 0.044715, %v700_v1  ;;  %v811_v1 = vand.u32 127, %v810_v53 }
 0xc02   :  { %v704_v3 = vadd.f32 %v702_v2, %v695_v62  ;;  %v814_v2 = vmul.u32 8, %v813_v60 }
 0xc04   :  { %v1077_v6 = vpop.eup %1076  ;;  %v706_v8 = vmul.f32 0.7978846, %v704_v3  ;;  %vm815_vm3 = vcmp.eq.s32.totalorder %v811_v1, %v814_v2 }
 0xc05   :  { %v709_v5 = vadd.f32 1.0, %v1077_v6 }
 0xc06   :  { %1078 = vtanh.f32 %v706_v8 }
 0xc07   :  { %v711_v9 = vmul.f32 0.5, %v709_v5 }
 0xc09   :  { %v713_v7 = vmul.f32 %v711_v9, %v692_v56  ;;  %v987_v9 = vsel %vm815_vm3, 1.0, %v1129_v40 }
 0xc0b   :  { %985 = vmatmul.msk.f32.vlgmr.msra.gmra.mxu3 %vm339_vm9, %v713_v7  ;;  %v1040_v7 = vld [vmem:[#allocation2 + $0x140] ss:$0 sm:$0xff] }
 0xc0c   :  { %v1079_v32 = vpop.eup %1078 }
 0xc0d   :  { %v710_v10 = vadd.f32 1.0, %v1079_v32 }
 0xc0f   :  { %v712_v11 = vmul.f32 0.5, %v710_v10 }
 0xc11   :  { %v714_v12 = vmul.f32 %v712_v11, %v695_v62 }
 0xc13   :  { %986 = vmatmul.msk.f32.gmra.mxu3 %vm339_vm9, %v714_v12  ;;  %vm846_vm9 = vcmask 1045504  }
 0xc14   :  { %989 = vmatpush.msk.msrb.mxu0 %vm846_vm9, %v806_v37 }
 0xc16   :  { %865 = vmatpush.msrb.mxu0 %v805_v39 }
 0xc8e   :  { %v747_v13 = vpop.f32.mrf.mxu3 }
 0xc8f   :  { %v748_v19 = vadd.f32 %v747_v13, %v723_v14 }
 0xc91   :  { %v753_v22 = vadd.f32 %v748_v19, %v660_v38  ;;  %v1041_v19 = vld [vmem:[#allocation2 + $0x150] ss:$0 sm:$0xff] }
 0xc93   :  { %v755_v23 = vsel %vm39_vm0, %v753_v22, 0.0 }
 0xc96   :  { %v750_v15 = vpop.f32.mrf.mxu3 }
 0xc97   :  { %v751_v17 = vadd.f32 %v750_v15, %v723_v14 }
 0xc99   :  { %v754_v18 = vadd.f32 %v751_v17, %v661_v44 }
 0xc9b   :  { %v758_v20 = vsel %vm39_vm0, %v754_v18, 0.0 }
 0xc9c   :  { %759 = vadd.xlane.f32.xlu1 %v758_v20 }
 0xca4   :  { %756 = vadd.xlane.f32.xlu1 %v755_v23 }
 0xd0f   :  { %v760_v24 = vpop.xlane.xlu1 %759 }
 0xd10   :  { %v762_v25 = vmul.f32 %v760_v24, %v1202_v4 }
 0xd12   :  { %v764_v27 = vsub.f32 %v754_v18, %v762_v25 }
 0xd14   :  { %v766_v16 = vmul.f32 %v764_v27, %v764_v27 }
 0xd16   :  { %v770_v28 = vsel %vm39_vm0, %v766_v16, 0.0 }
 0xd17   :  { %771 = vadd.xlane.f32.xlu1 %v770_v28  ;;  %v757_v29 = vpop.xlane.xlu1 %756 }
 0xd18   :  { %v761_v21 = vmul.f32 %v757_v29, %v1202_v4 }
 0xd1a   :  { %v763_v30 = vsub.f32 %v753_v22, %v761_v21 }
 0xd1c   :  { %v765_v31 = vmul.f32 %v763_v30, %v763_v30 }
 0xd1e   :  { %v767_v33 = vsel %vm39_vm0, %v765_v31, 0.0  ;;  %vm842_vm0 = vcmask 113664  }
 0xd1f   :  { %768 = vadd.xlane.f32.xlu2 %v767_v33  ;;  %990 = vmatmul.msk.f32.vlgmr.msrb.gmra.mxu0 %vm842_vm0, %v1324_v41  ;;  %vm952_vm0 = vcmask 73800  }
 0xd30   :  { %878 = vrot.lane.b32.xlu1 %v1315_v34, %s1125_s19 }
 0xd38   :  { %522 = vrot.lane.b32.xlu1 %v1284_v52, %s1130_s30 }
 0xd8a   :  { %v772_v35 = vpop.xlane.xlu1 %771 }
 0xd8b   :  { %v774_v36 = vmul.f32 %v772_v35, %v1202_v4 }
 0xd8d   :  { %v776_v38 = vadd.f32 1e-05, %v774_v36 }
 0xd8f   :  { %1080 = vrsqrt.f32 %v776_v38  ;;  %vm793_vm11 = vweird.f32 %v776_v38 }
 0xd92   :  { %v769_v42 = vpop.xlane.xlu2 %768 }
 0xd93   :  { %v773_v52 = vmul.f32 %v769_v42, %v1202_v4  ;;  %v802_v4 = vperm.slane %v1300_v26, 4 }
 0xd95   :  { %v1081_v43 = vpop.eup %1080  ;;  %v775_v44 = vadd.f32 1e-05, %v773_v52 }
 0xd96   :  { %v788_v45 = vmul.f32 %v1081_v43, %v776_v38  ;;  %vm794_vm10 = vweird.f32 %v1081_v43 }
 0xd97   :  { %1082 = vrsqrt.f32 %v775_v44  ;;  %vm795_vm12 = vmor %vm793_vm11, %vm794_vm10  ;;  %vm783_vm14 = vweird.f32 %v775_v44 }
 0xd98   :  { %v789_v46 = vmul.f32 %v1081_v43, %v788_v45  ;;  %v1133_v45 = vmov 2.0  }
 0xd9a   :  { %v790_v47 = vmul.f32 0.5, %v789_v46 }
 0xd9c   :  { %v791_v48 = vsub.f32 1.5, %v790_v47  ;;  %v867_v32 = vpop.f32.mrf.mxu0 }
 0xd9d   :  { %v1083_v49 = vpop.eup %1082  ;;  %v868_v10 = vadd.f32 %v1040_v7, %v867_v32 }
 0xd9e   :  { %v792_v50 = vmul.f32 %v1081_v43, %v791_v48  ;;  %v778_v51 = vmul.f32 %v1083_v49, %v775_v44  ;;  %vm784_vm13 = vweird.f32 %v1083_v49 }
 0xd9f   :  { %vm785_vm15 = vmor %vm783_vm14, %vm784_vm13  ;;  %1084 = vtanh.f32 %v868_v10 }
 0xda0   :  { %v796_v55 = vsel %vm795_vm12, %v1081_v43, %v792_v50  ;;  %v779_v56 = vmul.f32 %v1083_v49, %v778_v51 }
 0xda1   :  { %v798_v57 = vmul.f32 %v796_v55, %v764_v27 }
 0xda2   :  { %v780_v58 = vmul.f32 0.5, %v779_v56  ;;  %v879_v59 = vpop.permute.xlu1 %878 }
 0xda3   :  { %v801_v61 = vmul.f32 %v799_v54, %v798_v57 }
 0xda4   :  { %v781_v62 = vsub.f32 1.5, %v780_v58 }
 0xda5   :  { %v804_v63 = vadd.f32 %v802_v4, %v801_v61  ;;  %v1085_v13 = vpop.eup %1084 }
 0xda6   :  { %v782_v0 = vmul.f32 %v1083_v49, %v781_v62  ;;  %v881_v15 = vmul.f32 %v1085_v13, %v879_v59 }
 0xda7   :  { %835 = vmatpush.msrb.mxu2 %v804_v63 }
 0xda8   :  { %v786_v3 = vsel %vm785_vm15, %v1083_v49, %v782_v0  ;;  %v882_v17 = vsel %vm873_vm4, %v881_v15, 0.0 }
 0xda9   :  { %v797_v6 = vmul.f32 %v786_v3, %v763_v30 }
 0xdaa   :  { %v523_v8 = vpop.permute.xlu1 %522 }
 0xdab   :  { %525 = vst.msk [vmem:[%s1347_s2 + $0x1] sm:$0x1] %vm519_vm2, %v523_v8  ;;  %v800_v26 = vmul.f32 %v799_v54, %v797_v6 }
 0xdad   :  { %v803_v5 = vadd.f32 %v802_v4, %v800_v26 }
 0xdaf   :  { %836 = vmatpush.msrb.mxu2 %v803_v5 }
 0xdb0   :  { %988 = vmatmul.msk.f32.vlgmr.msrb.gmra.mxu2 %vm110_vm1, %v987_v9 }
 0xe33   :  { %v838_v11 = vpop.f32.mrf.mxu2 }
 0xe34   :  { %v872_v12 = vmul.f32 %v1315_v34, %v838_v11 }
 0xe36   :  { %v874_v14 = vsel %vm873_vm4, %v872_v12, 0.0 }
 0xe37   :  { %875 = vadd.xlane.f32.xlu2 %v874_v14 }
 0xe3f   :  { %883 = vadd.xlane.f32.xlu2 %v882_v17 }
 0xeaa   :  { %v876_v18 = vpop.xlane.xlu2 %875 }
 0xeb2   :  { %v884_v40 = vpop.xlane.xlu2 %883 }
 0xeb3   :  { %v885_v20 = vadd.f32 %v884_v40, %v876_v18 }
 0xeb5   :  { %v887_v22 = vadd.f32 %v1041_v19, %v885_v20 }
 0xeb7   :  { %v991_v23 = vmul.f32 -1.442695, %v887_v22  ;;  %923 = vrot.lane.b32.xlu0 %v887_v22, %s1131_s6  ;;  %v914_v39 = vand.u32 2147483647, %v887_v22  ;;  %v913_v48 = vmax.f32 %v887_v22, 0.0 }
 0xeb9   :  { %1086 = vpow2.f32 %v991_v23  ;;  %v915_v42 = vsub.f32 0.0, %v914_v39 }
 0xebb   :  { %v916_v52 = vmul.f32 1.442695, %v915_v42 }
 0xebf   :  { %v1087_v24 = vpop.eup %1086 }
 0xec0   :  { %v891_v25 = vadd.f32 1.0, %v1087_v24 }
 0xec2   :  { %1088 = vrcp.f32 %v891_v25  ;;  %v903_v29 = vand.u32 2147483648, %v891_v25  ;;  %v901_v30 = vand.u32 2147483647, %v891_v25  ;;  %vm897_vm2 = vweird.f32 %v891_v25 }
 0xec3   :  { %1090 = vpow2.f32 %v916_v52 }
 0xec4   :  { %v904_v33 = vor.u32 1.1754944e-38, %v903_v29  ;;  %vm902_vm6 = vcmp.eq.f32.partialorder %v901_v30, 8.507059e+37 }
 0xec8   :  { %v1089_v27 = vpop.eup %1088 }
 0xec9   :  { %v893_v16 = vmul.f32 %v1089_v27, %v891_v25  ;;  %vm898_vm1 = vweird.f32 %v1089_v27  ;;  %v1091_v43 = vpop.eup %1090 }
 0xeca   :  { %vm899_vm5 = vmor %vm897_vm2, %vm898_vm1  ;;  %v918_v44 = vadd.f32 1.0, %v1091_v43 }
 0xecb   :  { %v894_v28 = vsub.f32 1.0, %v893_v16 }
 0xecc   :  { %1092 = vlog2.f32 %v918_v44 }
 0xecd   :  { %v895_v21 = vmul.f32 %v1089_v27, %v894_v28  ;;  %1094 = vrcp.f32 %v1133_v45 }
 0xecf   :  { %v896_v31 = vadd.f32 %v1089_v27, %v895_v21 }
 0xed1   :  { %v900_v34 = vsel %vm899_vm5, %v1089_v27, %v896_v31 }
 0xed2   :  { %v905_v35 = vsel %vm902_vm6, %v904_v33, %v900_v34  ;;  %v1093_v46 = vpop.eup %1092 }
 0xed3   :  { %908 = vrot.lane.b32.xlu1 %v905_v35, %s1124_s15  ;;  %v1095_v47 = vpop.eup %1094 }
 0xed4   :  { %v941_v49 = vmul.f32 2.0, %v1095_v47  ;;  %vm945_vm9 = vweird.f32 %v1095_v47 }
 0xed6   :  { %v942_v54 = vsub.f32 1.0, %v941_v49 }
 0xed8   :  { %v943_v57 = vmul.f32 %v1095_v47, %v942_v54 }
 0xeda   :  { %v944_v59 = vadd.f32 %v1095_v47, %v943_v57 }
 0xedc   :  { %v946_v62 = vsel %vm945_vm9, %v1095_v47, %v944_v59 }
 0xf29   :  { %v924_v36 = vpop.permute.xlu0 %923 }
 0xf2a   :  { %v926_v37 = vmul.f32 %v924_v36, %v1324_v41  ;;  %v920_v41 = vmul.f32 0.6931472, %v1093_v46 }
 0xf2c   :  { %928 = vrot.lane.b32.xlu2 %v926_v37, %s1132_s7  ;;  %v921_v50 = vadd.f32 %v920_v41, %v913_v48 }
 0xf45   :  { %v909_v38 = vpop.permute.xlu1 %908 }
 0xf46   :  { %912 = vst.msk [vmem:[%s1347_s2] sm:$0x3] %vm911_vm7, %v909_v38 }
 0xf86   :  { %v929_v51 = vpop.permute.xlu2 %928 }
 0xf87   :  { %v931_v53 = vsub.f32 %v921_v50, %v929_v51 }
 0xf89   :  { %v933_v55 = vsel %vm932_vm8, %v931_v53, 0.0 }
 0xf8a   :  { %v934_v56 = vrot.slane %v933_v55, 4 }
 0xf8c   :  { %v935_v4 = vadd.f32 %v934_v56, %v933_v55 }
 0xf8e   :  { %v936_v58 = vrot.slane %v935_v4, 2 }
 0xf90   :  { %v937_v60 = vadd.f32 %v936_v58, %v935_v4 }
 0xf92   :  { %v938_v61 = vrot.slane %v937_v60, 1 }
 0xf94   :  { %v939_v63 = vadd.f32 %v938_v61, %v937_v60 }
 0xf96   :  { %v947_v0 = vmul.f32 %v946_v62, %v939_v63 }
 0xf98   :  { %949 = vrot.lane.b32.xlu0 %v947_v0, %s1134_s10 }
0x100a   :  { %v950_v1 = vpop.permute.xlu0 %949 }
0x100b   :  { %953 = vst.msk [vmem:[%s1347_s2] sm:$0x1] %vm952_vm0, %v950_v1 }
0x100c   :  { %958 = vsyncpa [#allocation3], 1 }

</bundles_post_ra>
